<compile_context>
chip_gen: v6e
topology: v6e:2x2x1
jax: 0.10.0
libtpu: 0.0.40
codegen_flags: <defaults>
</compile_context>

<pallas_src>
import functools

import jax
import jax.numpy as jnp
from jax import lax
from jax.experimental import pallas as pl
from jax.experimental.pallas import tpu as pltpu


def _tcn_kernel(dilations, paddings, K,
                x_ref,      # [1, C_in, L]   f32
                gln_ref,    # [C_in, 2]      f32   (lane 0 = gain, lane 1 = bias)
                wbn_ref,    # [BN, C_in]     matmul dtype
                bbn_ref,    # [BN, 1]        f32
                w1_ref,     # [n, H, BN]     matmul dtype
                hp_ref,     # [H, n*(6+K)]   f32   per-block H-dim columns (see layout)
                wrs_ref,    # [n, 2BN, H]    matmul dtype (res ; skip fused)
                brsb_ref,   # [2BN, n]       f32
                wout_ref,   # [out, BN]      matmul dtype
                bout_ref,   # [out, 1]       f32
                alpha_ref,  # [1, 2n+1]      f32   PReLU slopes
                out_ref):   # [1, out, L]    f32
    eps = 1e-8
    n_blocks, H, BN = w1_ref.shape
    L = x_ref.shape[-1]
    NPH = 6 + K                 # per-block column count: b1,g1,be1,bd,g2,be2,wd[0..K-1]
    mmdt = wbn_ref.dtype        # matmul operand dtype (bf16 in production, f32 for checks)

    # ---- hoisted lane iota + depthwise boundary masks (one per distinct shift) ----
    lane = lax.broadcasted_iota(jnp.int32, (1, L), 1)
    shift_mask = {}
    for d, p in zip(dilations, paddings):
        for k in range(K):
            s = k * d - p
            if s != 0 and s not in shift_mask:
                shift_mask[s] = ((lane + s >= 0) & (lane + s < L)).astype(jnp.float32)

    def col(ref, j):                           # [D, 1] parameter column (static lane slice)
        return ref[:, j:j + 1]

    def prelu(y, a):                           # a: (1,1)
        return jnp.where(y > 0, y, a * y)

    def groupnorm(y, g_col, be_col):
        # GroupNorm(1, D): per-sample stats over the full [D, L] slab.
        # Single-pass variance (E[y^2]-mean^2, clamped) + vector rsqrt (EUP slot).
        D = y.shape[0]
        inv_n = 1.0 / (D * L)
        s1 = jnp.sum(y, axis=0, keepdims=True)             # (1, L)
        s2 = jnp.sum(y * y, axis=0, keepdims=True)         # (1, L)
        mean = jnp.sum(s1, axis=1, keepdims=True) * inv_n  # (1, 1)
        ex2 = jnp.sum(s2, axis=1, keepdims=True) * inv_n   # (1, 1)
        var = jnp.maximum(ex2 - mean * mean, 0.0)          # clamp f32 rounding
        rstd = lax.rsqrt(var + eps)
        return (y - mean) * (rstd * g_col) + be_col

    def depthwise(y, base, d, p):
        # Dilated depthwise conv with zero padding: lane roll + hoisted boundary mask.
        acc = None
        for k in range(K):
            s = k * d - p
            wk = col(hp_ref, base + 6 + k)                 # [H, 1] tap weight
            if s == 0:
                tap = y
            else:
                tap = pltpu.roll(y, shift=(-s) % L, axis=1) * shift_mask[s]
            term = wk * tap
            acc = term if acc is None else acc + term
        return acc + col(hp_ref, base + 3)                 # + depthwise bias

    # ---- front end: GroupNorm(1, input_dim) -> bottleneck 1x1 conv ----
    x = groupnorm(x_ref[0], col(gln_ref, 0), col(gln_ref, 1))
    xcur = jnp.dot(wbn_ref[...], x.astype(mmdt),
                   preferred_element_type=jnp.float32) + bbn_ref[...]

    # ---- unrolled DepthConv1d blocks (static dilation per block) ----
    skip = None
    for i, (d, p) in enumerate(zip(dilations, paddings)):
        base = i * NPH
        a1 = alpha_ref[0:1, 2 * i:2 * i + 1]
        a2 = alpha_ref[0:1, 2 * i + 1:2 * i + 2]
        y = jnp.dot(w1_ref[i], xcur.astype(mmdt),
                    preferred_element_type=jnp.float32) + col(hp_ref, base + 0)
        y = prelu(y, a1)
        y = groupnorm(y, col(hp_ref, base + 1), col(hp_ref, base + 2))
        y = depthwise(y, base, d, p)
        y = prelu(y, a2)
        y = groupnorm(y, col(hp_ref, base + 4), col(hp_ref, base + 5))
        # fused residual + skip projection: one [2*BN, H] x [H, L] matmul
        rs = jnp.dot(wrs_ref[i], y.astype(mmdt),
                     preferred_element_type=jnp.float32) + brsb_ref[:, i:i + 1]
        xcur = xcur + rs[:BN]
        skip = rs[BN:] if skip is None else skip + rs[BN:]   # block 0 writes directly

    # ---- output layer: PReLU -> 1x1 conv on the skip sum (lane-dense store) ----
    a_out = alpha_ref[0:1, 2 * n_blocks:2 * n_blocks + 1]
    sk = prelu(skip, a_out)
    out = jnp.dot(wout_ref[...], sk.astype(mmdt),
                  preferred_element_type=jnp.float32) + bout_ref[...]
    out_ref[0] = out.astype(out_ref.dtype)


def tcn_forward(x, params, *, dilations, kernel=3, matmul_dtype=jnp.float32):
    """x: [B, input_dim, L] -> [B, output_dim, L]. Non-causal, skip=True."""
    B, C_in, L = x.shape
    blocks = params["blocks"]
    n_blocks = len(blocks)
    assert len(dilations) == n_blocks
    paddings = tuple(int(d) for d in dilations)       # TCN uses padding = 2**i = dilation
    for d, p in zip(dilations, paddings):
        assert 2 * p == d * (kernel - 1), "only 'same'-length non-causal blocks supported"
    H, BN = blocks[0]["w1"].shape
    out_dim = params["w_out"].shape[0]
    assert L % 128 == 0, "choose L a multiple of 128 for lane-dense vregs"
    assert BN % 8 == 0 and H % 8 == 0, "keep channel dims sublane-aligned"

    f32 = jnp.float32
    mm = matmul_dtype
    NPH = 6 + kernel

    # matmul weights (bf16 = MXU-native on v5e/v6e/v7x; f32 accumulation in-kernel)
    W1 = jnp.stack([b["w1"] for b in blocks]).astype(mm)                   # [n, H, BN]
    WRS = jnp.stack([jnp.concatenate([b["wres"], b["wskip"]], axis=0)
                     for b in blocks]).astype(mm)                          # [n, 2BN, H]
    WBN = params["w_bn"].astype(mm)                                        # [BN, C_in]
    WOUT = params["w_out"].astype(mm)                                      # [out, BN]

    # per-channel column params packed into lane-dense slabs (no [C,1] padding waste)
    hp_cols = []
    for b in blocks:
        hp_cols += [b["b1"], b["g1"], b["be1"], b["bd"], b["g2"], b["be2"]]
        hp_cols += [b["wd"][:, k] for k in range(kernel)]
    HP = jnp.stack(hp_cols, axis=1).astype(f32)                            # [H, n*NPH]
    BRSB = jnp.stack([jnp.concatenate([b["bres"], b["bskip"]]) for b in blocks],
                     axis=1).astype(f32)                                   # [2BN, n]
    GLN = jnp.stack([params["g_ln"], params["be_ln"]], axis=1).astype(f32)  # [C_in, 2]
    BBN = params["b_bn"].reshape(-1, 1).astype(f32)                        # [BN, 1]
    BOUT = params["b_out"].reshape(-1, 1).astype(f32)                      # [out, 1]
    alpha_list = []
    for b in blocks:
        alpha_list += [b["a1"], b["a2"]]
    alpha_list.append(params["a_out"])
    ALPHA = jnp.array(alpha_list, f32).reshape(1, -1)                      # [1, 2n+1]
    n_alpha = 2 * n_blocks + 1

    x_f32 = x.astype(f32)

    # VMEM budget + advisory cost estimate
    param_arrays = (GLN, WBN, BBN, W1, HP, WRS, BRSB, WOUT, BOUT, ALPHA)
    weight_bytes = sum(int(a.size) * a.dtype.itemsize for a in param_arrays)
    act_bytes = 4 * L * (6 * H + 4 * BN + C_in + out_dim)     # live per-sample temporaries
    io_bytes = 2 * 4 * L * (C_in + out_dim)                   # double-buffered in/out blocks
    vmem_limit = int(min(64 * 2 ** 20, max(16 * 2 ** 20,
                                           2 * (weight_bytes + act_bytes + io_bytes))))
    mm_flops = 2 * L * (BN * C_in + n_blocks * (H * BN + 2 * BN * H) + out_dim * BN)
    dw_flops = 2 * n_blocks * kernel * H * L
    ew_flops = 10 * n_blocks * H * L
    cost = pl.CostEstimate(
        flops=int(B * (mm_flops + dw_flops + ew_flops)),
        transcendentals=int(B * (2 * n_blocks + 1)),
        bytes_accessed=int(B * (C_in + out_dim) * L * 4 + weight_bytes))

    kern = functools.partial(_tcn_kernel, tuple(int(d) for d in dilations), paddings, kernel)
    out = pl.pallas_call(
        kern,
        grid=(B,),
        out_shape=jax.ShapeDtypeStruct((B, out_dim, L), f32),
        in_specs=[
            pl.BlockSpec((1, C_in, L), lambda b: (b, 0, 0)),            # per-sample input
            pl.BlockSpec((C_in, 2), lambda b: (0, 0)),                  # weights: constant
            pl.BlockSpec((BN, C_in), lambda b: (0, 0)),                 # blocks -> DMA'd once,
            pl.BlockSpec((BN, 1), lambda b: (0, 0)),                    # resident across grid
            pl.BlockSpec((n_blocks, H, BN), lambda b: (0, 0, 0)),
            pl.BlockSpec((H, n_blocks * NPH), lambda b: (0, 0)),
            pl.BlockSpec((n_blocks, 2 * BN, H), lambda b: (0, 0, 0)),
            pl.BlockSpec((2 * BN, n_blocks), lambda b: (0, 0)),
            pl.BlockSpec((out_dim, BN), lambda b: (0, 0)),
            pl.BlockSpec((out_dim, 1), lambda b: (0, 0)),
            pl.BlockSpec((1, n_alpha), lambda b: (0, 0)),
        ],
        out_specs=pl.BlockSpec((1, out_dim, L), lambda b: (b, 0, 0)),
        compiler_params=pltpu.CompilerParams(
            dimension_semantics=("parallel",),
            vmem_limit_bytes=vmem_limit),
        cost_estimate=cost,
    )(x_f32, GLN, WBN, BBN, W1, HP, WRS, BRSB, WOUT, BOUT, ALPHA)
    return out


def reference(x, params, *, dilations, kernel=3):
    """Pure-JAX mirror of the PyTorch TCN forward (non-causal, skip=True)."""
    eps = 1e-8
    prec = lax.Precision.HIGHEST

    def gn(y, g, be):
        mean = y.mean(axis=(1, 2), keepdims=True)
        var = ((y - mean) ** 2).mean(axis=(1, 2), keepdims=True)
        return (y - mean) / jnp.sqrt(var + eps) * g[None, :, None] + be[None, :, None]

    def prelu(y, a):
        return jnp.where(y > 0, y, a * y)

    L = x.shape[-1]
    y = gn(x, params["g_ln"], params["be_ln"])
    out = jnp.einsum("oc,bcl->bol", params["w_bn"], y, precision=prec) + params["b_bn"][None, :, None]
    skip_sum = jnp.zeros_like(out)
    for blk, d in zip(params["blocks"], dilations):
        p = d
        h = jnp.einsum("hc,bcl->bhl", blk["w1"], out, precision=prec) + blk["b1"][None, :, None]
        h = prelu(h, blk["a1"])
        h = gn(h, blk["g1"], blk["be1"])
        h_pad = jnp.pad(h, ((0, 0), (0, 0), (p, p)))
        dc = jnp.zeros_like(h)
        for k in range(kernel):
            dc = dc + blk["wd"][:, k][None, :, None] * h_pad[:, :, k * d:k * d + L]
        h = dc + blk["bd"][None, :, None]
        h = prelu(h, blk["a2"])
        h = gn(h, blk["g2"], blk["be2"])
        res = jnp.einsum("ch,bhl->bcl", blk["wres"], h, precision=prec) + blk["bres"][None, :, None]
        skp = jnp.einsum("ch,bhl->bcl", blk["wskip"], h, precision=prec) + blk["bskip"][None, :, None]
        out = out + res
        skip_sum = skip_sum + skp
    y = prelu(skip_sum, params["a_out"])
    return jnp.einsum("oc,bcl->bol", params["w_out"], y, precision=prec) + params["b_out"][None, :, None]


if __name__ == "__main__":
    B, C_IN, BN_DIM, HIDDEN, OUT_DIM, L = 2, 16, 16, 32, 16, 128   # L = 128 (lane-dense)
    LAYER, STACK, KERNEL = 2, 1, 3
    dilations = tuple(2 ** i for _ in range(STACK) for i in range(LAYER))   # (1, 2)
    n_blocks = STACK * LAYER

    key = jax.random.PRNGKey(0)
    ks = iter(jax.random.split(key, 12 * n_blocks + 16))
    s = 0.1
    rnd = lambda shape: jax.random.normal(next(ks), shape, jnp.float32) * s

    blocks = []
    for _ in range(n_blocks):
        blocks.append(dict(
            w1=rnd((HIDDEN, BN_DIM)), b1=rnd((HIDDEN,)), a1=jnp.float32(0.25),
            g1=jnp.ones((HIDDEN,), jnp.float32) + rnd((HIDDEN,)), be1=rnd((HIDDEN,)),
            wd=rnd((HIDDEN, KERNEL)), bd=rnd((HIDDEN,)), a2=jnp.float32(0.25),
            g2=jnp.ones((HIDDEN,), jnp.float32) + rnd((HIDDEN,)), be2=rnd((HIDDEN,)),
            wres=rnd((BN_DIM, HIDDEN)), bres=rnd((BN_DIM,)),
            wskip=rnd((BN_DIM, HIDDEN)), bskip=rnd((BN_DIM,)),
        ))
    params = dict(
        g_ln=jnp.ones((C_IN,), jnp.float32) + rnd((C_IN,)), be_ln=rnd((C_IN,)),
        w_bn=rnd((BN_DIM, C_IN)), b_bn=rnd((BN_DIM,)),
        blocks=blocks,
        a_out=jnp.float32(0.25),
        w_out=rnd((OUT_DIM, BN_DIM)), b_out=rnd((OUT_DIM,)),
    )
    x = jax.random.normal(next(ks), (B, C_IN, L), jnp.float32)

    ref = reference(x, params, dilations=dilations, kernel=KERNEL)

    # f32 matmul path: tight check against the HIGHEST-precision JAX reference
    out_f32 = tcn_forward(x, params, dilations=dilations, kernel=KERNEL,
                          matmul_dtype=jnp.float32)
    jax.block_until_ready(out_f32)
    assert out_f32.shape == (B, OUT_DIM, L)
    assert bool(jnp.all(jnp.isfinite(out_f32)))
    assert jnp.allclose(out_f32, ref, atol=2e-3, rtol=2e-3), float(jnp.max(jnp.abs(out_f32 - ref)))

    # bf16 matmul path (MXU-native on v5e/v6e/v7x): looser tolerance, f32 accumulation
    out_bf16 = tcn_forward(x, params, dilations=dilations, kernel=KERNEL,
                           matmul_dtype=jnp.bfloat16)
    jax.block_until_ready(out_bf16)
    assert bool(jnp.all(jnp.isfinite(out_bf16)))
    assert jnp.allclose(out_bf16, ref, atol=5e-2, rtol=5e-2), float(jnp.max(jnp.abs(out_bf16 - ref)))

    print("KERNEL_OK")
</pallas_src>

<mosaic_0001>
module attributes {stable_mosaic.version = 11 : i64} {
  func.func @_tcn_kernel(%arg0: i32, %arg1: memref<1x16x128xf32, #tpu.memory_space<vmem>>, %arg2: memref<16x2xf32, #tpu.memory_space<vmem>>, %arg3: memref<16x16xf32, #tpu.memory_space<vmem>>, %arg4: memref<16x1xf32, #tpu.memory_space<vmem>>, %arg5: memref<2x32x16xf32, #tpu.memory_space<vmem>>, %arg6: memref<32x18xf32, #tpu.memory_space<vmem>>, %arg7: memref<2x32x32xf32, #tpu.memory_space<vmem>>, %arg8: memref<32x2xf32, #tpu.memory_space<vmem>>, %arg9: memref<16x16xf32, #tpu.memory_space<vmem>>, %arg10: memref<16x1xf32, #tpu.memory_space<vmem>>, %arg11: memref<1x5xf32, #tpu.memory_space<vmem>>, %arg12: memref<1x16x128xf32, #tpu.memory_space<vmem>>) attributes {dimension_semantics = [#tpu.dimension_semantics<parallel>], iteration_bounds = array<i64: 2>, scalar_prefetch = 0 : i64, scratch_operands = 0 : i64, tpu.core_type = #tpu.core_type<tc>, window_params = [{transform_indices = @transform_0, window_bounds = array<i64: 1, 16, 128>}, {pipeline_mode = #tpu.pipeline_mode<synchronous>, transform_indices = @transform_1, window_bounds = array<i64: 16, 2>}, {pipeline_mode = #tpu.pipeline_mode<synchronous>, transform_indices = @transform_2, window_bounds = array<i64: 16, 16>}, {pipeline_mode = #tpu.pipeline_mode<synchronous>, transform_indices = @transform_3, window_bounds = array<i64: 16, 1>}, {pipeline_mode = #tpu.pipeline_mode<synchronous>, transform_indices = @transform_4, window_bounds = array<i64: 2, 32, 16>}, {pipeline_mode = #tpu.pipeline_mode<synchronous>, transform_indices = @transform_5, window_bounds = array<i64: 32, 18>}, {pipeline_mode = #tpu.pipeline_mode<synchronous>, transform_indices = @transform_6, window_bounds = array<i64: 2, 32, 32>}, {pipeline_mode = #tpu.pipeline_mode<synchronous>, transform_indices = @transform_7, window_bounds = array<i64: 32, 2>}, {pipeline_mode = #tpu.pipeline_mode<synchronous>, transform_indices = @transform_8, window_bounds = array<i64: 16, 16>}, {pipeline_mode = #tpu.pipeline_mode<synchronous>, transform_indices = @transform_9, window_bounds = array<i64: 16, 1>}, {pipeline_mode = #tpu.pipeline_mode<synchronous>, transform_indices = @transform_10, window_bounds = array<i64: 1, 5>}, {transform_indices = @transform_11, window_bounds = array<i64: 1, 16, 128>}]} {
    %0 = tpu.iota {dimensions = array<i32: 1>} : vector<1x128xi32>
    %c-1_i32 = arith.constant -1 : i32
    %1 = vector.broadcast %c-1_i32 : i32 to vector<1x128xi32>
    %2 = arith.addi %0, %1 : vector<1x128xi32>
    %c0_i32 = arith.constant 0 : i32
    %3 = vector.broadcast %c0_i32 : i32 to vector<1x128xi32>
    %4 = arith.cmpi sge, %2, %3 : vector<1x128xi32>
    %c-1_i32_0 = arith.constant -1 : i32
    %5 = vector.broadcast %c-1_i32_0 : i32 to vector<1x128xi32>
    %6 = arith.addi %0, %5 : vector<1x128xi32>
    %c128_i32 = arith.constant 128 : i32
    %7 = vector.broadcast %c128_i32 : i32 to vector<1x128xi32>
    %8 = arith.cmpi slt, %6, %7 : vector<1x128xi32>
    %9 = arith.andi %4, %8 : vector<1x128xi1>
    %10 = arith.extui %9 : vector<1x128xi1> to vector<1x128xi32>
    %11 = arith.sitofp %10 : vector<1x128xi32> to vector<1x128xf32>
    %c1_i32 = arith.constant 1 : i32
    %12 = vector.broadcast %c1_i32 : i32 to vector<1x128xi32>
    %13 = arith.addi %0, %12 : vector<1x128xi32>
    %c0_i32_1 = arith.constant 0 : i32
    %14 = vector.broadcast %c0_i32_1 : i32 to vector<1x128xi32>
    %15 = arith.cmpi sge, %13, %14 : vector<1x128xi32>
    %c1_i32_2 = arith.constant 1 : i32
    %16 = vector.broadcast %c1_i32_2 : i32 to vector<1x128xi32>
    %17 = arith.addi %0, %16 : vector<1x128xi32>
    %c128_i32_3 = arith.constant 128 : i32
    %18 = vector.broadcast %c128_i32_3 : i32 to vector<1x128xi32>
    %19 = arith.cmpi slt, %17, %18 : vector<1x128xi32>
    %20 = arith.andi %15, %19 : vector<1x128xi1>
    %21 = arith.extui %20 : vector<1x128xi1> to vector<1x128xi32>
    %22 = arith.sitofp %21 : vector<1x128xi32> to vector<1x128xf32>
    %c-2_i32 = arith.constant -2 : i32
    %23 = vector.broadcast %c-2_i32 : i32 to vector<1x128xi32>
    %24 = arith.addi %0, %23 : vector<1x128xi32>
    %c0_i32_4 = arith.constant 0 : i32
    %25 = vector.broadcast %c0_i32_4 : i32 to vector<1x128xi32>
    %26 = arith.cmpi sge, %24, %25 : vector<1x128xi32>
    %c-2_i32_5 = arith.constant -2 : i32
    %27 = vector.broadcast %c-2_i32_5 : i32 to vector<1x128xi32>
    %28 = arith.addi %0, %27 : vector<1x128xi32>
    %c128_i32_6 = arith.constant 128 : i32
    %29 = vector.broadcast %c128_i32_6 : i32 to vector<1x128xi32>
    %30 = arith.cmpi slt, %28, %29 : vector<1x128xi32>
    %31 = arith.andi %26, %30 : vector<1x128xi1>
    %32 = arith.extui %31 : vector<1x128xi1> to vector<1x128xi32>
    %33 = arith.sitofp %32 : vector<1x128xi32> to vector<1x128xf32>
    %c2_i32 = arith.constant 2 : i32
    %34 = vector.broadcast %c2_i32 : i32 to vector<1x128xi32>
    %35 = arith.addi %0, %34 : vector<1x128xi32>
    %c0_i32_7 = arith.constant 0 : i32
    %36 = vector.broadcast %c0_i32_7 : i32 to vector<1x128xi32>
    %37 = arith.cmpi sge, %35, %36 : vector<1x128xi32>
    %c2_i32_8 = arith.constant 2 : i32
    %38 = vector.broadcast %c2_i32_8 : i32 to vector<1x128xi32>
    %39 = arith.addi %0, %38 : vector<1x128xi32>
    %c128_i32_9 = arith.constant 128 : i32
    %40 = vector.broadcast %c128_i32_9 : i32 to vector<1x128xi32>
    %41 = arith.cmpi slt, %39, %40 : vector<1x128xi32>
    %42 = arith.andi %37, %41 : vector<1x128xi1>
    %43 = arith.extui %42 : vector<1x128xi1> to vector<1x128xi32>
    %44 = arith.sitofp %43 : vector<1x128xi32> to vector<1x128xf32>
    %c0 = arith.constant 0 : index
    %c0_10 = arith.constant 0 : index
    %c0_11 = arith.constant 0 : index
    %45 = vector.load %arg1[%c0, %c0_10, %c0_11] : memref<1x16x128xf32, #tpu.memory_space<vmem>>, vector<1x16x128xf32>
    %46 = vector.shape_cast %45 : vector<1x16x128xf32> to vector<16x128xf32>
    %c0_12 = arith.constant 0 : index
    %c0_13 = arith.constant 0 : index
    %47 = vector.load %arg2[%c0_12, %c0_13] : memref<16x2xf32, #tpu.memory_space<vmem>>, vector<16x1xf32>
    %c0_14 = arith.constant 0 : index
    %c1 = arith.constant 1 : index
    %48 = vector.load %arg2[%c0_14, %c1] : memref<16x2xf32, #tpu.memory_space<vmem>>, vector<16x1xf32>
    %cst = arith.constant dense<0.000000e+00> : vector<128xf32>
    %49 = vector.multi_reduction <add>, %46, %cst [0] : vector<16x128xf32> to vector<128xf32>
    %50 = vector.shape_cast %49 : vector<128xf32> to vector<1x128xf32>
    %51 = arith.mulf %46, %46 : vector<16x128xf32>
    %cst_15 = arith.constant dense<0.000000e+00> : vector<128xf32>
    %52 = vector.multi_reduction <add>, %51, %cst_15 [0] : vector<16x128xf32> to vector<128xf32>
    %53 = vector.shape_cast %52 : vector<128xf32> to vector<1x128xf32>
    %cst_16 = arith.constant dense<0.000000e+00> : vector<1xf32>
    %54 = vector.multi_reduction <add>, %50, %cst_16 [1] : vector<1x128xf32> to vector<1xf32>
    %55 = vector.shape_cast %54 : vector<1xf32> to vector<1x1xf32>
    %cst_17 = arith.constant 4.8828125E-4 : f32
    %56 = vector.broadcast %cst_17 : f32 to vector<1x1xf32>
    %57 = arith.mulf %55, %56 : vector<1x1xf32>
    %cst_18 = arith.constant dense<0.000000e+00> : vector<1xf32>
    %58 = vector.multi_reduction <add>, %53, %cst_18 [1] : vector<1x128xf32> to vector<1xf32>
    %59 = vector.shape_cast %58 : vector<1xf32> to vector<1x1xf32>
    %cst_19 = arith.constant 4.8828125E-4 : f32
    %60 = vector.broadcast %cst_19 : f32 to vector<1x1xf32>
    %61 = arith.mulf %59, %60 : vector<1x1xf32>
    %62 = arith.mulf %57, %57 : vector<1x1xf32>
    %63 = arith.subf %61, %62 : vector<1x1xf32>
    %cst_20 = arith.constant 0.000000e+00 : f32
    %64 = vector.broadcast %cst_20 : f32 to vector<1x1xf32>
    %65 = arith.maximumf %63, %64 : vector<1x1xf32>
    %cst_21 = arith.constant 9.99999993E-9 : f32
    %66 = vector.broadcast %cst_21 : f32 to vector<1x1xf32>
    %67 = arith.addf %65, %66 : vector<1x1xf32>
    %68 = math.rsqrt %67 : vector<1x1xf32>
    %69 = vector.broadcast %57 : vector<1x1xf32> to vector<16x128xf32>
    %70 = arith.subf %46, %69 : vector<16x128xf32>
    %71 = vector.broadcast %68 : vector<1x1xf32> to vector<16x1xf32>
    %72 = arith.mulf %71, %47 : vector<16x1xf32>
    %73 = vector.broadcast %72 : vector<16x1xf32> to vector<16x128xf32>
    %74 = arith.mulf %70, %73 : vector<16x128xf32>
    %75 = vector.broadcast %48 : vector<16x1xf32> to vector<16x128xf32>
    %76 = arith.addf %74, %75 : vector<16x128xf32>
    %c0_22 = arith.constant 0 : index
    %c0_23 = arith.constant 0 : index
    %77 = vector.load %arg3[%c0_22, %c0_23] : memref<16x16xf32, #tpu.memory_space<vmem>>, vector<16x16xf32>
    %cst_24 = arith.constant dense<0.000000e+00> : vector<16x128xf32>
    %78 = tpu.matmul %77, %76, %cst_24 {dimension_numbers = #tpu.dot_dimension_numbers<[1], [0], [0], [1], [0, 0, 1, 1], [], []>} : vector<16x16xf32>, vector<16x128xf32>, vector<16x128xf32> -> vector<16x128xf32>
    %c0_25 = arith.constant 0 : index
    %c0_26 = arith.constant 0 : index
    %79 = vector.load %arg4[%c0_25, %c0_26] : memref<16x1xf32, #tpu.memory_space<vmem>>, vector<16x1xf32>
    %80 = vector.broadcast %79 : vector<16x1xf32> to vector<16x128xf32>
    %81 = arith.addf %78, %80 : vector<16x128xf32>
    %c0_27 = arith.constant 0 : index
    %c0_28 = arith.constant 0 : index
    %82 = vector.load %arg11[%c0_27, %c0_28] : memref<1x5xf32, #tpu.memory_space<vmem>>, vector<1x1xf32>
    %c0_29 = arith.constant 0 : index
    %c1_30 = arith.constant 1 : index
    %83 = vector.load %arg11[%c0_29, %c1_30] : memref<1x5xf32, #tpu.memory_space<vmem>>, vector<1x1xf32>
    %c0_31 = arith.constant 0 : index
    %c0_32 = arith.constant 0 : index
    %c0_33 = arith.constant 0 : index
    %84 = vector.load %arg5[%c0_31, %c0_32, %c0_33] : memref<2x32x16xf32, #tpu.memory_space<vmem>>, vector<1x32x16xf32>
    %85 = vector.shape_cast %84 : vector<1x32x16xf32> to vector<32x16xf32>
    %cst_34 = arith.constant dense<0.000000e+00> : vector<32x128xf32>
    %86 = tpu.matmul %85, %81, %cst_34 {dimension_numbers = #tpu.dot_dimension_numbers<[1], [0], [0], [1], [0, 0, 1, 1], [], []>} : vector<32x16xf32>, vector<16x128xf32>, vector<32x128xf32> -> vector<32x128xf32>
    %c0_35 = arith.constant 0 : index
    %c0_36 = arith.constant 0 : index
    %87 = vector.load %arg6[%c0_35, %c0_36] : memref<32x18xf32, #tpu.memory_space<vmem>>, vector<32x1xf32>
    %88 = vector.broadcast %87 : vector<32x1xf32> to vector<32x128xf32>
    %89 = arith.addf %86, %88 : vector<32x128xf32>
    %cst_37 = arith.constant 0.000000e+00 : f32
    %90 = vector.broadcast %cst_37 : f32 to vector<32x128xf32>
    %91 = arith.cmpf ogt, %89, %90 : vector<32x128xf32>
    %92 = vector.broadcast %82 : vector<1x1xf32> to vector<32x128xf32>
    %93 = arith.mulf %92, %89 : vector<32x128xf32>
    %94 = arith.select %91, %89, %93 : vector<32x128xi1>, vector<32x128xf32>
    %c0_38 = arith.constant 0 : index
    %c1_39 = arith.constant 1 : index
    %95 = vector.load %arg6[%c0_38, %c1_39] : memref<32x18xf32, #tpu.memory_space<vmem>>, vector<32x1xf32>
    %c0_40 = arith.constant 0 : index
    %c2 = arith.constant 2 : index
    %96 = vector.load %arg6[%c0_40, %c2] : memref<32x18xf32, #tpu.memory_space<vmem>>, vector<32x1xf32>
    %cst_41 = arith.constant dense<0.000000e+00> : vector<128xf32>
    %97 = vector.multi_reduction <add>, %94, %cst_41 [0] : vector<32x128xf32> to vector<128xf32>
    %98 = vector.shape_cast %97 : vector<128xf32> to vector<1x128xf32>
    %99 = arith.mulf %94, %94 : vector<32x128xf32>
    %cst_42 = arith.constant dense<0.000000e+00> : vector<128xf32>
    %100 = vector.multi_reduction <add>, %99, %cst_42 [0] : vector<32x128xf32> to vector<128xf32>
    %101 = vector.shape_cast %100 : vector<128xf32> to vector<1x128xf32>
    %cst_43 = arith.constant dense<0.000000e+00> : vector<1xf32>
    %102 = vector.multi_reduction <add>, %98, %cst_43 [1] : vector<1x128xf32> to vector<1xf32>
    %103 = vector.shape_cast %102 : vector<1xf32> to vector<1x1xf32>
    %cst_44 = arith.constant 2.44140625E-4 : f32
    %104 = vector.broadcast %cst_44 : f32 to vector<1x1xf32>
    %105 = arith.mulf %103, %104 : vector<1x1xf32>
    %cst_45 = arith.constant dense<0.000000e+00> : vector<1xf32>
    %106 = vector.multi_reduction <add>, %101, %cst_45 [1] : vector<1x128xf32> to vector<1xf32>
    %107 = vector.shape_cast %106 : vector<1xf32> to vector<1x1xf32>
    %cst_46 = arith.constant 2.44140625E-4 : f32
    %108 = vector.broadcast %cst_46 : f32 to vector<1x1xf32>
    %109 = arith.mulf %107, %108 : vector<1x1xf32>
    %110 = arith.mulf %105, %105 : vector<1x1xf32>
    %111 = arith.subf %109, %110 : vector<1x1xf32>
    %cst_47 = arith.constant 0.000000e+00 : f32
    %112 = vector.broadcast %cst_47 : f32 to vector<1x1xf32>
    %113 = arith.maximumf %111, %112 : vector<1x1xf32>
    %cst_48 = arith.constant 9.99999993E-9 : f32
    %114 = vector.broadcast %cst_48 : f32 to vector<1x1xf32>
    %115 = arith.addf %113, %114 : vector<1x1xf32>
    %116 = math.rsqrt %115 : vector<1x1xf32>
    %117 = vector.broadcast %105 : vector<1x1xf32> to vector<32x128xf32>
    %118 = arith.subf %94, %117 : vector<32x128xf32>
    %119 = vector.broadcast %116 : vector<1x1xf32> to vector<32x1xf32>
    %120 = arith.mulf %119, %95 : vector<32x1xf32>
    %121 = vector.broadcast %120 : vector<32x1xf32> to vector<32x128xf32>
    %122 = arith.mulf %118, %121 : vector<32x128xf32>
    %123 = vector.broadcast %96 : vector<32x1xf32> to vector<32x128xf32>
    %124 = arith.addf %122, %123 : vector<32x128xf32>
    %c0_49 = arith.constant 0 : index
    %c6 = arith.constant 6 : index
    %125 = vector.load %arg6[%c0_49, %c6] : memref<32x18xf32, #tpu.memory_space<vmem>>, vector<32x1xf32>
    %c1_i32_50 = arith.constant 1 : i32
    %126 = tpu.dynamic_rotate %124 by %c1_i32_50 dim 1 : vector<32x128xf32>, i32 -> vector<32x128xf32>
    %127 = vector.broadcast %11 : vector<1x128xf32> to vector<32x128xf32>
    %128 = arith.mulf %126, %127 : vector<32x128xf32>
    %129 = vector.broadcast %125 : vector<32x1xf32> to vector<32x128xf32>
    %130 = arith.mulf %129, %128 : vector<32x128xf32>
    %c0_51 = arith.constant 0 : index
    %c7 = arith.constant 7 : index
    %131 = vector.load %arg6[%c0_51, %c7] : memref<32x18xf32, #tpu.memory_space<vmem>>, vector<32x1xf32>
    %132 = vector.broadcast %131 : vector<32x1xf32> to vector<32x128xf32>
    %133 = arith.mulf %132, %124 : vector<32x128xf32>
    %134 = arith.addf %130, %133 : vector<32x128xf32>
    %c0_52 = arith.constant 0 : index
    %c8 = arith.constant 8 : index
    %135 = vector.load %arg6[%c0_52, %c8] : memref<32x18xf32, #tpu.memory_space<vmem>>, vector<32x1xf32>
    %c127_i32 = arith.constant 127 : i32
    %136 = tpu.dynamic_rotate %124 by %c127_i32 dim 1 : vector<32x128xf32>, i32 -> vector<32x128xf32>
    %137 = vector.broadcast %22 : vector<1x128xf32> to vector<32x128xf32>
    %138 = arith.mulf %136, %137 : vector<32x128xf32>
    %139 = vector.broadcast %135 : vector<32x1xf32> to vector<32x128xf32>
    %140 = arith.mulf %139, %138 : vector<32x128xf32>
    %141 = arith.addf %134, %140 : vector<32x128xf32>
    %c0_53 = arith.constant 0 : index
    %c3 = arith.constant 3 : index
    %142 = vector.load %arg6[%c0_53, %c3] : memref<32x18xf32, #tpu.memory_space<vmem>>, vector<32x1xf32>
    %143 = vector.broadcast %142 : vector<32x1xf32> to vector<32x128xf32>
    %144 = arith.addf %141, %143 : vector<32x128xf32>
    %cst_54 = arith.constant 0.000000e+00 : f32
    %145 = vector.broadcast %cst_54 : f32 to vector<32x128xf32>
    %146 = arith.cmpf ogt, %144, %145 : vector<32x128xf32>
    %147 = vector.broadcast %83 : vector<1x1xf32> to vector<32x128xf32>
    %148 = arith.mulf %147, %144 : vector<32x128xf32>
    %149 = arith.select %146, %144, %148 : vector<32x128xi1>, vector<32x128xf32>
    %c0_55 = arith.constant 0 : index
    %c4 = arith.constant 4 : index
    %150 = vector.load %arg6[%c0_55, %c4] : memref<32x18xf32, #tpu.memory_space<vmem>>, vector<32x1xf32>
    %c0_56 = arith.constant 0 : index
    %c5 = arith.constant 5 : index
    %151 = vector.load %arg6[%c0_56, %c5] : memref<32x18xf32, #tpu.memory_space<vmem>>, vector<32x1xf32>
    %cst_57 = arith.constant dense<0.000000e+00> : vector<128xf32>
    %152 = vector.multi_reduction <add>, %149, %cst_57 [0] : vector<32x128xf32> to vector<128xf32>
    %153 = vector.shape_cast %152 : vector<128xf32> to vector<1x128xf32>
    %154 = arith.mulf %149, %149 : vector<32x128xf32>
    %cst_58 = arith.constant dense<0.000000e+00> : vector<128xf32>
    %155 = vector.multi_reduction <add>, %154, %cst_58 [0] : vector<32x128xf32> to vector<128xf32>
    %156 = vector.shape_cast %155 : vector<128xf32> to vector<1x128xf32>
    %cst_59 = arith.constant dense<0.000000e+00> : vector<1xf32>
    %157 = vector.multi_reduction <add>, %153, %cst_59 [1] : vector<1x128xf32> to vector<1xf32>
    %158 = vector.shape_cast %157 : vector<1xf32> to vector<1x1xf32>
    %cst_60 = arith.constant 2.44140625E-4 : f32
    %159 = vector.broadcast %cst_60 : f32 to vector<1x1xf32>
    %160 = arith.mulf %158, %159 : vector<1x1xf32>
    %cst_61 = arith.constant dense<0.000000e+00> : vector<1xf32>
    %161 = vector.multi_reduction <add>, %156, %cst_61 [1] : vector<1x128xf32> to vector<1xf32>
    %162 = vector.shape_cast %161 : vector<1xf32> to vector<1x1xf32>
    %cst_62 = arith.constant 2.44140625E-4 : f32
    %163 = vector.broadcast %cst_62 : f32 to vector<1x1xf32>
    %164 = arith.mulf %162, %163 : vector<1x1xf32>
    %165 = arith.mulf %160, %160 : vector<1x1xf32>
    %166 = arith.subf %164, %165 : vector<1x1xf32>
    %cst_63 = arith.constant 0.000000e+00 : f32
    %167 = vector.broadcast %cst_63 : f32 to vector<1x1xf32>
    %168 = arith.maximumf %166, %167 : vector<1x1xf32>
    %cst_64 = arith.constant 9.99999993E-9 : f32
    %169 = vector.broadcast %cst_64 : f32 to vector<1x1xf32>
    %170 = arith.addf %168, %169 : vector<1x1xf32>
    %171 = math.rsqrt %170 : vector<1x1xf32>
    %172 = vector.broadcast %160 : vector<1x1xf32> to vector<32x128xf32>
    %173 = arith.subf %149, %172 : vector<32x128xf32>
    %174 = vector.broadcast %171 : vector<1x1xf32> to vector<32x1xf32>
    %175 = arith.mulf %174, %150 : vector<32x1xf32>
    %176 = vector.broadcast %175 : vector<32x1xf32> to vector<32x128xf32>
    %177 = arith.mulf %173, %176 : vector<32x128xf32>
    %178 = vector.broadcast %151 : vector<32x1xf32> to vector<32x128xf32>
    %179 = arith.addf %177, %178 : vector<32x128xf32>
    %c0_65 = arith.constant 0 : index
    %c0_66 = arith.constant 0 : index
    %c0_67 = arith.constant 0 : index
    %180 = vector.load %arg7[%c0_65, %c0_66, %c0_67] : memref<2x32x32xf32, #tpu.memory_space<vmem>>, vector<1x32x32xf32>
    %181 = vector.shape_cast %180 : vector<1x32x32xf32> to vector<32x32xf32>
    %cst_68 = arith.constant dense<0.000000e+00> : vector<32x128xf32>
    %182 = tpu.matmul %181, %179, %cst_68 {dimension_numbers = #tpu.dot_dimension_numbers<[1], [0], [0], [1], [0, 0, 1, 1], [], []>} : vector<32x32xf32>, vector<32x128xf32>, vector<32x128xf32> -> vector<32x128xf32>
    %c0_69 = arith.constant 0 : index
    %c0_70 = arith.constant 0 : index
    %183 = vector.load %arg8[%c0_69, %c0_70] : memref<32x2xf32, #tpu.memory_space<vmem>>, vector<32x1xf32>
    %184 = vector.broadcast %183 : vector<32x1xf32> to vector<32x128xf32>
    %185 = arith.addf %182, %184 : vector<32x128xf32>
    %186 = vector.extract_strided_slice %185 {offsets = [0, 0], sizes = [16, 128], strides = [1, 1]} : vector<32x128xf32> to vector<16x128xf32>
    %187 = arith.addf %81, %186 : vector<16x128xf32>
    %188 = vector.extract_strided_slice %185 {offsets = [16, 0], sizes = [16, 128], strides = [1, 1]} : vector<32x128xf32> to vector<16x128xf32>
    %c0_71 = arith.constant 0 : index
    %c2_72 = arith.constant 2 : index
    %189 = vector.load %arg11[%c0_71, %c2_72] : memref<1x5xf32, #tpu.memory_space<vmem>>, vector<1x1xf32>
    %c0_73 = arith.constant 0 : index
    %c3_74 = arith.constant 3 : index
    %190 = vector.load %arg11[%c0_73, %c3_74] : memref<1x5xf32, #tpu.memory_space<vmem>>, vector<1x1xf32>
    %c1_75 = arith.constant 1 : index
    %c0_76 = arith.constant 0 : index
    %c0_77 = arith.constant 0 : index
    %191 = vector.load %arg5[%c1_75, %c0_76, %c0_77] : memref<2x32x16xf32, #tpu.memory_space<vmem>>, vector<1x32x16xf32>
    %192 = vector.shape_cast %191 : vector<1x32x16xf32> to vector<32x16xf32>
    %cst_78 = arith.constant dense<0.000000e+00> : vector<32x128xf32>
    %193 = tpu.matmul %192, %187, %cst_78 {dimension_numbers = #tpu.dot_dimension_numbers<[1], [0], [0], [1], [0, 0, 1, 1], [], []>} : vector<32x16xf32>, vector<16x128xf32>, vector<32x128xf32> -> vector<32x128xf32>
    %c0_79 = arith.constant 0 : index
    %c9 = arith.constant 9 : index
    %194 = vector.load %arg6[%c0_79, %c9] : memref<32x18xf32, #tpu.memory_space<vmem>>, vector<32x1xf32>
    %195 = vector.broadcast %194 : vector<32x1xf32> to vector<32x128xf32>
    %196 = arith.addf %193, %195 : vector<32x128xf32>
    %cst_80 = arith.constant 0.000000e+00 : f32
    %197 = vector.broadcast %cst_80 : f32 to vector<32x128xf32>
    %198 = arith.cmpf ogt, %196, %197 : vector<32x128xf32>
    %199 = vector.broadcast %189 : vector<1x1xf32> to vector<32x128xf32>
    %200 = arith.mulf %199, %196 : vector<32x128xf32>
    %201 = arith.select %198, %196, %200 : vector<32x128xi1>, vector<32x128xf32>
    %c0_81 = arith.constant 0 : index
    %c10 = arith.constant 10 : index
    %202 = vector.load %arg6[%c0_81, %c10] : memref<32x18xf32, #tpu.memory_space<vmem>>, vector<32x1xf32>
    %c0_82 = arith.constant 0 : index
    %c11 = arith.constant 11 : index
    %203 = vector.load %arg6[%c0_82, %c11] : memref<32x18xf32, #tpu.memory_space<vmem>>, vector<32x1xf32>
    %cst_83 = arith.constant dense<0.000000e+00> : vector<128xf32>
    %204 = vector.multi_reduction <add>, %201, %cst_83 [0] : vector<32x128xf32> to vector<128xf32>
    %205 = vector.shape_cast %204 : vector<128xf32> to vector<1x128xf32>
    %206 = arith.mulf %201, %201 : vector<32x128xf32>
    %cst_84 = arith.constant dense<0.000000e+00> : vector<128xf32>
    %207 = vector.multi_reduction <add>, %206, %cst_84 [0] : vector<32x128xf32> to vector<128xf32>
    %208 = vector.shape_cast %207 : vector<128xf32> to vector<1x128xf32>
    %cst_85 = arith.constant dense<0.000000e+00> : vector<1xf32>
    %209 = vector.multi_reduction <add>, %205, %cst_85 [1] : vector<1x128xf32> to vector<1xf32>
    %210 = vector.shape_cast %209 : vector<1xf32> to vector<1x1xf32>
    %cst_86 = arith.constant 2.44140625E-4 : f32
    %211 = vector.broadcast %cst_86 : f32 to vector<1x1xf32>
    %212 = arith.mulf %210, %211 : vector<1x1xf32>
    %cst_87 = arith.constant dense<0.000000e+00> : vector<1xf32>
    %213 = vector.multi_reduction <add>, %208, %cst_87 [1] : vector<1x128xf32> to vector<1xf32>
    %214 = vector.shape_cast %213 : vector<1xf32> to vector<1x1xf32>
    %cst_88 = arith.constant 2.44140625E-4 : f32
    %215 = vector.broadcast %cst_88 : f32 to vector<1x1xf32>
    %216 = arith.mulf %214, %215 : vector<1x1xf32>
    %217 = arith.mulf %212, %212 : vector<1x1xf32>
    %218 = arith.subf %216, %217 : vector<1x1xf32>
    %cst_89 = arith.constant 0.000000e+00 : f32
    %219 = vector.broadcast %cst_89 : f32 to vector<1x1xf32>
    %220 = arith.maximumf %218, %219 : vector<1x1xf32>
    %cst_90 = arith.constant 9.99999993E-9 : f32
    %221 = vector.broadcast %cst_90 : f32 to vector<1x1xf32>
    %222 = arith.addf %220, %221 : vector<1x1xf32>
    %223 = math.rsqrt %222 : vector<1x1xf32>
    %224 = vector.broadcast %212 : vector<1x1xf32> to vector<32x128xf32>
    %225 = arith.subf %201, %224 : vector<32x128xf32>
    %226 = vector.broadcast %223 : vector<1x1xf32> to vector<32x1xf32>
    %227 = arith.mulf %226, %202 : vector<32x1xf32>
    %228 = vector.broadcast %227 : vector<32x1xf32> to vector<32x128xf32>
    %229 = arith.mulf %225, %228 : vector<32x128xf32>
    %230 = vector.broadcast %203 : vector<32x1xf32> to vector<32x128xf32>
    %231 = arith.addf %229, %230 : vector<32x128xf32>
    %c0_91 = arith.constant 0 : index
    %c15 = arith.constant 15 : index
    %232 = vector.load %arg6[%c0_91, %c15] : memref<32x18xf32, #tpu.memory_space<vmem>>, vector<32x1xf32>
    %c2_i32_92 = arith.constant 2 : i32
    %233 = tpu.dynamic_rotate %231 by %c2_i32_92 dim 1 : vector<32x128xf32>, i32 -> vector<32x128xf32>
    %234 = vector.broadcast %33 : vector<1x128xf32> to vector<32x128xf32>
    %235 = arith.mulf %233, %234 : vector<32x128xf32>
    %236 = vector.broadcast %232 : vector<32x1xf32> to vector<32x128xf32>
    %237 = arith.mulf %236, %235 : vector<32x128xf32>
    %c0_93 = arith.constant 0 : index
    %c16 = arith.constant 16 : index
    %238 = vector.load %arg6[%c0_93, %c16] : memref<32x18xf32, #tpu.memory_space<vmem>>, vector<32x1xf32>
    %239 = vector.broadcast %238 : vector<32x1xf32> to vector<32x128xf32>
    %240 = arith.mulf %239, %231 : vector<32x128xf32>
    %241 = arith.addf %237, %240 : vector<32x128xf32>
    %c0_94 = arith.constant 0 : index
    %c17 = arith.constant 17 : index
    %242 = vector.load %arg6[%c0_94, %c17] : memref<32x18xf32, #tpu.memory_space<vmem>>, vector<32x1xf32>
    %c126_i32 = arith.constant 126 : i32
    %243 = tpu.dynamic_rotate %231 by %c126_i32 dim 1 : vector<32x128xf32>, i32 -> vector<32x128xf32>
    %244 = vector.broadcast %44 : vector<1x128xf32> to vector<32x128xf32>
    %245 = arith.mulf %243, %244 : vector<32x128xf32>
    %246 = vector.broadcast %242 : vector<32x1xf32> to vector<32x128xf32>
    %247 = arith.mulf %246, %245 : vector<32x128xf32>
    %248 = arith.addf %241, %247 : vector<32x128xf32>
    %c0_95 = arith.constant 0 : index
    %c12 = arith.constant 12 : index
    %249 = vector.load %arg6[%c0_95, %c12] : memref<32x18xf32, #tpu.memory_space<vmem>>, vector<32x1xf32>
    %250 = vector.broadcast %249 : vector<32x1xf32> to vector<32x128xf32>
    %251 = arith.addf %248, %250 : vector<32x128xf32>
    %cst_96 = arith.constant 0.000000e+00 : f32
    %252 = vector.broadcast %cst_96 : f32 to vector<32x128xf32>
    %253 = arith.cmpf ogt, %251, %252 : vector<32x128xf32>
    %254 = vector.broadcast %190 : vector<1x1xf32> to vector<32x128xf32>
    %255 = arith.mulf %254, %251 : vector<32x128xf32>
    %256 = arith.select %253, %251, %255 : vector<32x128xi1>, vector<32x128xf32>
    %c0_97 = arith.constant 0 : index
    %c13 = arith.constant 13 : index
    %257 = vector.load %arg6[%c0_97, %c13] : memref<32x18xf32, #tpu.memory_space<vmem>>, vector<32x1xf32>
    %c0_98 = arith.constant 0 : index
    %c14 = arith.constant 14 : index
    %258 = vector.load %arg6[%c0_98, %c14] : memref<32x18xf32, #tpu.memory_space<vmem>>, vector<32x1xf32>
    %cst_99 = arith.constant dense<0.000000e+00> : vector<128xf32>
    %259 = vector.multi_reduction <add>, %256, %cst_99 [0] : vector<32x128xf32> to vector<128xf32>
    %260 = vector.shape_cast %259 : vector<128xf32> to vector<1x128xf32>
    %261 = arith.mulf %256, %256 : vector<32x128xf32>
    %cst_100 = arith.constant dense<0.000000e+00> : vector<128xf32>
    %262 = vector.multi_reduction <add>, %261, %cst_100 [0] : vector<32x128xf32> to vector<128xf32>
    %263 = vector.shape_cast %262 : vector<128xf32> to vector<1x128xf32>
    %cst_101 = arith.constant dense<0.000000e+00> : vector<1xf32>
    %264 = vector.multi_reduction <add>, %260, %cst_101 [1] : vector<1x128xf32> to vector<1xf32>
    %265 = vector.shape_cast %264 : vector<1xf32> to vector<1x1xf32>
    %cst_102 = arith.constant 2.44140625E-4 : f32
    %266 = vector.broadcast %cst_102 : f32 to vector<1x1xf32>
    %267 = arith.mulf %265, %266 : vector<1x1xf32>
    %cst_103 = arith.constant dense<0.000000e+00> : vector<1xf32>
    %268 = vector.multi_reduction <add>, %263, %cst_103 [1] : vector<1x128xf32> to vector<1xf32>
    %269 = vector.shape_cast %268 : vector<1xf32> to vector<1x1xf32>
    %cst_104 = arith.constant 2.44140625E-4 : f32
    %270 = vector.broadcast %cst_104 : f32 to vector<1x1xf32>
    %271 = arith.mulf %269, %270 : vector<1x1xf32>
    %272 = arith.mulf %267, %267 : vector<1x1xf32>
    %273 = arith.subf %271, %272 : vector<1x1xf32>
    %cst_105 = arith.constant 0.000000e+00 : f32
    %274 = vector.broadcast %cst_105 : f32 to vector<1x1xf32>
    %275 = arith.maximumf %273, %274 : vector<1x1xf32>
    %cst_106 = arith.constant 9.99999993E-9 : f32
    %276 = vector.broadcast %cst_106 : f32 to vector<1x1xf32>
    %277 = arith.addf %275, %276 : vector<1x1xf32>
    %278 = math.rsqrt %277 : vector<1x1xf32>
    %279 = vector.broadcast %267 : vector<1x1xf32> to vector<32x128xf32>
    %280 = arith.subf %256, %279 : vector<32x128xf32>
    %281 = vector.broadcast %278 : vector<1x1xf32> to vector<32x1xf32>
    %282 = arith.mulf %281, %257 : vector<32x1xf32>
    %283 = vector.broadcast %282 : vector<32x1xf32> to vector<32x128xf32>
    %284 = arith.mulf %280, %283 : vector<32x128xf32>
    %285 = vector.broadcast %258 : vector<32x1xf32> to vector<32x128xf32>
    %286 = arith.addf %284, %285 : vector<32x128xf32>
    %c1_107 = arith.constant 1 : index
    %c0_108 = arith.constant 0 : index
    %c0_109 = arith.constant 0 : index
    %287 = vector.load %arg7[%c1_107, %c0_108, %c0_109] : memref<2x32x32xf32, #tpu.memory_space<vmem>>, vector<1x32x32xf32>
    %288 = vector.shape_cast %287 : vector<1x32x32xf32> to vector<32x32xf32>
    %cst_110 = arith.constant dense<0.000000e+00> : vector<32x128xf32>
    %289 = tpu.matmul %288, %286, %cst_110 {dimension_numbers = #tpu.dot_dimension_numbers<[1], [0], [0], [1], [0, 0, 1, 1], [], []>} : vector<32x32xf32>, vector<32x128xf32>, vector<32x128xf32> -> vector<32x128xf32>
    %c0_111 = arith.constant 0 : index
    %c1_112 = arith.constant 1 : index
    %290 = vector.load %arg8[%c0_111, %c1_112] : memref<32x2xf32, #tpu.memory_space<vmem>>, vector<32x1xf32>
    %291 = vector.broadcast %290 : vector<32x1xf32> to vector<32x128xf32>
    %292 = arith.addf %289, %291 : vector<32x128xf32>
    %293 = vector.extract_strided_slice %292 {offsets = [16, 0], sizes = [16, 128], strides = [1, 1]} : vector<32x128xf32> to vector<16x128xf32>
    %294 = arith.addf %188, %293 : vector<16x128xf32>
    %c0_113 = arith.constant 0 : index
    %c4_114 = arith.constant 4 : index
    %295 = vector.load %arg11[%c0_113, %c4_114] : memref<1x5xf32, #tpu.memory_space<vmem>>, vector<1x1xf32>
    %cst_115 = arith.constant 0.000000e+00 : f32
    %296 = vector.broadcast %cst_115 : f32 to vector<16x128xf32>
    %297 = arith.cmpf ogt, %294, %296 : vector<16x128xf32>
    %298 = vector.broadcast %295 : vector<1x1xf32> to vector<16x128xf32>
    %299 = arith.mulf %298, %294 : vector<16x128xf32>
    %300 = arith.select %297, %294, %299 : vector<16x128xi1>, vector<16x128xf32>
    %c0_116 = arith.constant 0 : index
    %c0_117 = arith.constant 0 : index
    %301 = vector.load %arg9[%c0_116, %c0_117] : memref<16x16xf32, #tpu.memory_space<vmem>>, vector<16x16xf32>
    %cst_118 = arith.constant dense<0.000000e+00> : vector<16x128xf32>
    %302 = tpu.matmul %301, %300, %cst_118 {dimension_numbers = #tpu.dot_dimension_numbers<[1], [0], [0], [1], [0, 0, 1, 1], [], []>} : vector<16x16xf32>, vector<16x128xf32>, vector<16x128xf32> -> vector<16x128xf32>
    %c0_119 = arith.constant 0 : index
    %c0_120 = arith.constant 0 : index
    %303 = vector.load %arg10[%c0_119, %c0_120] : memref<16x1xf32, #tpu.memory_space<vmem>>, vector<16x1xf32>
    %304 = vector.broadcast %303 : vector<16x1xf32> to vector<16x128xf32>
    %305 = arith.addf %302, %304 : vector<16x128xf32>
    %c0_121 = arith.constant 0 : index
    %c0_122 = arith.constant 0 : index
    %c0_123 = arith.constant 0 : index
    %306 = vector.load %arg12[%c0_121, %c0_122, %c0_123] : memref<1x16x128xf32, #tpu.memory_space<vmem>>, vector<1x16x128xf32>
    %307 = vector.shape_cast %306 : vector<1x16x128xf32> to vector<16x128xf32>
    %308 = vector.shape_cast %305 : vector<16x128xf32> to vector<1x16x128xf32>
    tpu.vector_store %arg12[%c0_121, %c0_122, %c0_123], %308 {strides = array<i32>} : memref<1x16x128xf32, #tpu.memory_space<vmem>>, vector<1x16x128xf32>,
    return
  }
  func.func @transform_0(%arg0: i32) -> (i32, i32, i32) {
    %c0_i32 = arith.constant 0 : i32
    %c0_i32_0 = arith.constant 0 : i32
    %c0_i32_1 = arith.constant 0 : i32
    return %arg0, %c0_i32, %c0_i32_0 : i32, i32, i32
  }
  func.func @transform_1(%arg0: i32) -> (i32, i32) {
    %c0_i32 = arith.constant 0 : i32
    %c0_i32_0 = arith.constant 0 : i32
    %c0_i32_1 = arith.constant 0 : i32
    return %c0_i32, %c0_i32_0 : i32, i32
  }
  func.func @transform_2(%arg0: i32) -> (i32, i32) {
    %c0_i32 = arith.constant 0 : i32
    %c0_i32_0 = arith.constant 0 : i32
    %c0_i32_1 = arith.constant 0 : i32
    return %c0_i32, %c0_i32_0 : i32, i32
  }
  func.func @transform_3(%arg0: i32) -> (i32, i32) {
    %c0_i32 = arith.constant 0 : i32
    %c0_i32_0 = arith.constant 0 : i32
    %c0_i32_1 = arith.constant 0 : i32
    return %c0_i32, %c0_i32_0 : i32, i32
  }
  func.func @transform_4(%arg0: i32) -> (i32, i32, i32) {
    %c0_i32 = arith.constant 0 : i32
    %c0_i32_0 = arith.constant 0 : i32
    %c0_i32_1 = arith.constant 0 : i32
    %c0_i32_2 = arith.constant 0 : i32
    return %c0_i32, %c0_i32_0, %c0_i32_1 : i32, i32, i32
  }
  func.func @transform_5(%arg0: i32) -> (i32, i32) {
    %c0_i32 = arith.constant 0 : i32
    %c0_i32_0 = arith.constant 0 : i32
    %c0_i32_1 = arith.constant 0 : i32
    return %c0_i32, %c0_i32_0 : i32, i32
  }
  func.func @transform_6(%arg0: i32) -> (i32, i32, i32) {
    %c0_i32 = arith.constant 0 : i32
    %c0_i32_0 = arith.constant 0 : i32
    %c0_i32_1 = arith.constant 0 : i32
    %c0_i32_2 = arith.constant 0 : i32
    return %c0_i32, %c0_i32_0, %c0_i32_1 : i32, i32, i32
  }
  func.func @transform_7(%arg0: i32) -> (i32, i32) {
    %c0_i32 = arith.constant 0 : i32
    %c0_i32_0 = arith.constant 0 : i32
    %c0_i32_1 = arith.constant 0 : i32
    return %c0_i32, %c0_i32_0 : i32, i32
  }
  func.func @transform_8(%arg0: i32) -> (i32, i32) {
    %c0_i32 = arith.constant 0 : i32
    %c0_i32_0 = arith.constant 0 : i32
    %c0_i32_1 = arith.constant 0 : i32
    return %c0_i32, %c0_i32_0 : i32, i32
  }
  func.func @transform_9(%arg0: i32) -> (i32, i32) {
    %c0_i32 = arith.constant 0 : i32
    %c0_i32_0 = arith.constant 0 : i32
    %c0_i32_1 = arith.constant 0 : i32
    return %c0_i32, %c0_i32_0 : i32, i32
  }
  func.func @transform_10(%arg0: i32) -> (i32, i32) {
    %c0_i32 = arith.constant 0 : i32
    %c0_i32_0 = arith.constant 0 : i32
    %c0_i32_1 = arith.constant 0 : i32
    return %c0_i32, %c0_i32_0 : i32, i32
  }
  func.func @transform_11(%arg0: i32) -> (i32, i32, i32) {
    %c0_i32 = arith.constant 0 : i32
    %c0_i32_0 = arith.constant 0 : i32
    %c0_i32_1 = arith.constant 0 : i32
    return %arg0, %c0_i32, %c0_i32_0 : i32, i32, i32
  }
}

</mosaic_0001>

<bundles_post_ra>
// kernel: tpu_custom_call.1
= control target key start
LH: loop header
LB: loop body
LE: loop exit
PB: predicated region body
PF: predicated region fallthrough
CT: control target
= control target key end

     0   :  { %s2812_s0 = inlined_call_operand.vmem [shape: f32[2,16,128], index: 0, kind: input, shape index: {}]   ;;  %s2813_s1 = inlined_call_operand.vmem [shape: f32[16,2], index: 1, kind: input, shape index: {}]   ;;  %s2814_s2 = inlined_call_operand.vmem [shape: f32[16,16], index: 2, kind: input, shape index: {}]   ;;  %s2815_s3 = inlined_call_operand.vmem [shape: f32[16,1], index: 3, kind: input, shape index: {}]   ;;  %s2816_s4 = inlined_call_operand.vmem [shape: f32[2,32,16], index: 4, kind: input, shape index: {}]   ;;  %s2817_s5 = inlined_call_operand.vmem [shape: f32[32,18], index: 5, kind: input, shape index: {}]   ;;  %s2818_s6 = inlined_call_operand.vmem [shape: f32[2,32,32], index: 6, kind: input, shape index: {}]   ;;  %s2819_s7 = inlined_call_operand.vmem [shape: f32[32,2], index: 7, kind: input, shape index: {}]   ;;  %s2820_s8 = inlined_call_operand.vmem [shape: f32[16,16], index: 8, kind: input, shape index: {}]   ;;  %s2821_s9 = inlined_call_operand.vmem [shape: f32[16,1], index: 9, kind: input, shape index: {}]   ;;  %s2822_s10 = inlined_call_operand.vmem [shape: f32[1,5], index: 10, kind: input, shape index: {}]   ;;  %s2823_s11 = inlined_call_operand.hbm [shape: f32[2,16,128], index: 11, kind: output, shape index: {}]  }
   0x1   :  { %2824 = sst [smem:[#allocation5_spill]] %s2812_s0 }
   0x2   :  { %16 = vsyncpa [#allocation3], 0 }
   0x3   :  { %18 = vsyncpa [#allocation3 + $0x1], 0  ;;  %s2298_s17 = smov 0   ;;  %s2300_s18 = smov 0  }
   0x4   :  { %s2302_s19 = smov 0   ;;  %s2304_s20 = smov 0  }
   0x5 LB: > { %s2319_s21 = sadd.s32 4294967295, %s2210_s20   ;;  %s1870_s22 = sadd.s32 4294967294, %s2210_s20   ;;  %s2210_s20 = sphi %s2304_s20, %s2831_s20   ;;  %s2206_s19 = sphi %s2302_s19, %s2830_s19   ;;  %s2202_s18 = sphi %s2300_s18, %s2829_s18   ;;  %s2198_s17 = sphi %s2298_s17, %s2828_s17  }
   0x6   : > { %s2323_s23 = sadd.s32 1, %s2210_s20   ;;  %s267_s24 = sadd.s32 1, %s2206_s19 }
   0x7   : > { %s264_s25 = ssub.s32 %s2210_s20, %s2323_s23  ;;  %p277_p0 = scmp.ne.s32.totalorder %s2206_s19, %s2202_s18 }
   0x8   : > { %p265_p1 = scmp.eq.s32.totalorder %s264_s25, 0  ;;  %p278_p2 = scmp.eq.s32.totalorder %s2319_s21, 1 }
   0x9   : > { %p283_p3 = scmp.ne.s32.totalorder %s2202_s18, %s2198_s17  ;;  %p284_p4 = scmp.eq.s32.totalorder %s1870_s22, 1 }
   0xa   : > { %s2334_s26 = scalar_select %p265_p1, %s2206_s19, %s267_s24  }
   0xb   : > { %p2336_p5 = por %p278_p2, %p277_p0  ;;  %p2340_p6 = por %p284_p4, %p283_p3 }
   0xc   : > { %p1873_p7 = scmp.ge.s32.totalorder %s2210_s20, 1  ;;  %p340_p8 = scmp.lt.s32.totalorder %s2210_s20, 3 }
   0xe   : > { %p341_p9 = pnand %p1873_p7, %p340_p8 }
   0xf   : > { %p380_p10 = scmp.lt.s32.totalorder (!%p341_p9), %s2319_s21, 1  ;;  %s2827_s0 = sld [smem:[#allocation5_spill]] (!%p341_p9) }
  0x10   : > { %344 = sbr.rel (%p341_p9) target bundleno = 3118 (0xc2e), region = 64  ;;  %s2219_s15 = smov (!%p341_p9), 1  }
  0x11   : > { %s2220_s16 = smov (!%p341_p9), 127   ;;  %s2231_s13 = smov (!%p341_p9), 2  }
  0x12   : > { %s377_s25 = sand.u32 (!%p341_p9), 1, %s2202_s18   ;;  %s2235_s24 = smov (!%p341_p9), [#allocation2]  }
  0x13   : > { %s2772_s22 = scalar_lea.sflag (!%p341_p9), [#allocation3], %s377_s25 }
  0x15   : > { %s381_s29 = scalar_select %p380_p10, %s2319_s21, 1  ;;  %v2212_v18 = vmov 0   ;;  %v414_v19 = vld [vmem:[%s2813_s1 + $0x8] sm:$0xff]  ;;  %v2213_v20 = vmov 1   ;;  %v413_v31 = vld [vmem:[%s2813_s1] sm:$0xff]  ;;  %vm484_vm0 = vcmask 130048  }
  0x16   : > { %2080 = vset.pattern.permute.xlu1 %v2212_v18  ;;  %2079 = vset.pattern.permute.xlu0 %v2213_v20  ;;  %v470_v33 = vld [vmem:[%s2814_s2] sm:$0xff]  ;;  %v473_v34 = vld [vmem:[%s2815_s3 + $0x8] sm:$0xff]  ;;  %v2396_v38 = vld [vmem:[%s2817_s5 + $0x10] sm:$0xff]  ;;  %vm1039_vm11 = vcmask 261120  }
  0x17   : > { %s1915_s30 = sshll.u32 %s381_s29, 4  ;;  %1957 = vmatprep.mubr.msk.f32.mxu0 %vm484_vm0, %v470_v33  ;;  %v472_v35 = vld [vmem:[%s2815_s3] sm:$0xff]  ;;  %v2390_v37 = vld [vmem:[%s2817_s5 + $0x8] sm:$0xff]  ;;  %v2408_v40 = vld [vmem:[%s2817_s5 + $0x18] sm:$0xff]  ;;  %s1874_s29 = sshll.u32 %s377_s25, 4 }
  0x18   : > { %s384_s14 = scalar_lea.vmem %s2827_s0, %s1915_s30  ;;  %v2384_v36 = vld [vmem:[%s2817_s5] sm:$0xff]  ;;  %v471_v51 = vld [vmem:[%s2814_s2 + $0x8] sm:$0xff]  ;;  %v569_v60 = vld [vmem:[%s2816_s4 + $0x10] sm:$0xff]  ;;  %s379_s30 = scalar_lea.vmem [#allocation2], %s1874_s29 }
  0x19   : > { %v2351_v0 = vld [vmem:[%s384_s14] sm:$0xff]  ;;  %v2353_v1 = vld [vmem:[%s384_s14 + $0x8] sm:$0xff]  ;;  %v570_v61 = vld [vmem:[%s2816_s4 + $0x18] sm:$0xff]  ;;  %s2232_s14 = smov 126   ;;  %s1808_s12 = sshll.u32 %s379_s30, 4  ;;  %s2765_s12 = int_to_ptr.vmem [resolvable:$true] %s1808_s12 }
  0x1a   : > { %v415_v2 = vadd.f32 %v2353_v1, %v2351_v0  ;;  %v422_v3 = vmul.f32 %v2351_v0, %v2351_v0  ;;  %v423_v4 = vmul.f32 %v2353_v1, %v2353_v1  ;;  %v2402_v39 = vld [vmem:[%s2822_s10] ss:$0 sm:$0xff]  ;;  %v568_v59 = vld [vmem:[%s2816_s4 + $0x8] sm:$0xff]  ;;  %s2154_s29 = sshll.u32 %s2235_s24, 4  ;;  %s2155_s29 = int_to_ptr.vmem [resolvable:$false] %s2154_s29 }
  0x1b   : > { %v567_v52 = vld [vmem:[%s2816_s4] sm:$0xff]  ;;  %s2156_s0 = scalar_lea.vmem %s2155_s29, 512  ;;  %p2157_p0 = scmp.lt.s32.totalorder %s2765_s12, %s2155_s29 }
  0x1c   : > { %v416_v5 = vrot.slane %v415_v2, 4  ;;  %v424_v6 = vadd.f32 %v423_v4, %v422_v3  ;;  %1964 = vmatprep.mubr.msk.f32.mxu1 %vm484_vm0, %v567_v52 }
  0x1e   : > { %v417_v7 = vadd.f32 %v416_v5, %v415_v2  ;;  %v425_v8 = vrot.slane %v424_v6, 4 }
  0x20   : > { %v418_v9 = vrot.slane %v417_v7, 2  ;;  %v426_v10 = vadd.f32 %v425_v8, %v424_v6 }
  0x22   : > { %v419_v11 = vadd.f32 %v418_v9, %v417_v7  ;;  %v427_v12 = vrot.slane %v426_v10, 2 }
  0x24   : > { %v420_v13 = vrot.slane %v419_v11, 1  ;;  %v428_v14 = vadd.f32 %v427_v12, %v426_v10 }
  0x26   : > { %v421_v15 = vadd.f32 %v420_v13, %v419_v11  ;;  %v429_v16 = vrot.slane %v428_v14, 1 }
  0x28   : > { %431 = vadd.xlane.f32.xlu0 %v421_v15  ;;  %v430_v17 = vadd.f32 %v429_v16, %v428_v14 }
  0x2c   : > { %434 = vadd.xlane.f32.xlu0 %v430_v17 }
  0x42   : > { %465 = vperm.xlu0 %2079, %v414_v19  }
  0xb1   : > { %v432_v21 = vpop.xlane.xlu0 %431 }
  0xb2   : > { %v433_v22 = vmul.f32 0.00048828125, %v432_v21 }
  0xb4   : > { %v437_v24 = vmul.f32 %v433_v22, %v433_v22  ;;  %v443_v41 = vsub.f32 %v2353_v1, %v433_v22  ;;  %v442_v47 = vsub.f32 %v2351_v0, %v433_v22 }
  0xb5   : > { %v435_v23 = vpop.xlane.xlu0 %434 }
  0xb6   : > { %v436_v25 = vmul.f32 0.00048828125, %v435_v23 }
  0xb8   : > { %v438_v26 = vsub.f32 %v436_v25, %v437_v24 }
  0xba   : > { %v439_v27 = vmax.f32 %v438_v26, 0.0 }
  0xbc   : > { %v440_v28 = vadd.f32 1e-08, %v439_v27 }
  0xbd   : > { %v466_v43 = vpop.permute.xlu0 %465 }
  0xbe   : > { %2135 = vrsqrt.f32 %v440_v28 }
  0xcb   : > { %v2136_v29 = vpop.eup %2135 }
  0xcc   : > { %v445_v30 = vmul.f32 %v2136_v29, %v414_v19  ;;  %v444_v32 = vmul.f32 %v2136_v29, %v413_v31 }
  0xce   : > { %453 = vperm.xlu1 %2080, %v445_v30  }
  0xd2   : > { %448 = vperm.xlu1 %2080, %v444_v32  }
  0xd6   : > { %2081 = vset.pattern.permute.xlu1 %v2213_v20 }
  0xd7   : > { %460 = vperm.xlu1 %2081, %v413_v31  }
  0xdb   : > { %2082 = vset.pattern.permute.xlu1 %v2212_v18 }
  0xdc   : > { %481 = vperm.xlu1 %2082, %v473_v34  }
  0xe0   : > { %476 = vperm.xlu1 %2082, %v472_v35  }
  0xe4   : > { %577 = vperm.xlu1 %2082, %v2384_v36  }
  0xe8   : > { %582 = vperm.xlu1 %2082, %v2390_v37  }
  0xec   : > { %587 = vperm.xlu1 %2082, %v2396_v38  }
  0xf0   : > { %702 = vperm.xlu1 %2082, %v2402_v39  }
  0xf4   : > { %592 = vperm.xlu1 %2082, %v2408_v40  }
 0x149   : > { %v454_v42 = vpop.permute.xlu1 %453 }
 0x14a   : > { %v457_v44 = vmul.f32 %v454_v42, %v443_v41 }
 0x14c   : > { %v469_v45 = vadd.f32 %v466_v43, %v457_v44 }
 0x14d   : > { %v449_v46 = vpop.permute.xlu1 %448 }
 0x14e   : > { %1953 = vmatprep.subr.mxu0 %v469_v45  ;;  %v456_v48 = vmul.f32 %v449_v46, %v442_v47 }
 0x14f   : > { %1954 = vmatpush3.msra.mxu0 %v469_v45 }
 0x152   : > { %v461_v49 = vpop.permute.xlu1 %460 }
 0x153   : > { %v468_v50 = vadd.f32 %v461_v49, %v456_v48  ;;  %v2214_v48 = vmov 2  }
 0x154   : > { %2083 = vset.pattern.permute.xlu1 %v2214_v48 }
 0x155   : > { %1955 = vmatprep.subr.mxu0 %v468_v50 }
 0x156   : > { %1956 = vmatpush3.msra.mxu0 %v468_v50 }
 0x157   : > { %1958 = vmatmul.mubr.msk.f32.vlgmr.msra.gmra.mxu0 %vm484_vm0, %v471_v51  ;;  %v482_v53 = vpop.permute.xlu1 %481 }
 0x15b   : > { %v477_v56 = vpop.permute.xlu1 %476 }
 0x15f   : > { %v578_v62 = vpop.permute.xlu1 %577 }
 0x163   : > { %v583_v63 = vpop.permute.xlu1 %582 }
 0x167   : > { %v588_v0 = vpop.permute.xlu1 %587 }
 0x16b   : > { %v703_v1 = vpop.permute.xlu1 %702 }
 0x16f   : > { %v593_v7 = vpop.permute.xlu1 %592 }
 0x217   : > { %v1959_v54 = vpop.f32.mrf.mxu0 }
 0x218   : > { %v2421_v55 = vadd.f32 %v1959_v54, %v482_v53 }
 0x219   : > { %v557_v57 = vpop.f32.mrf.mxu0 }
 0x21a   : > { %v2423_v58 = vadd.f32 %v557_v57, %v477_v56  ;;  %1960 = vmatprep.subr.mxu1 %v2421_v55 }
 0x21b   : > { %1961 = vmatpush3.msra.mxu1 %v2421_v55 }
 0x21c   : > { %1962 = vmatprep.subr.mxu1 %v2423_v58 }
 0x21d   : > { %1963 = vmatpush3.msra.mxu1 %v2423_v58 }
 0x21e   : > { %1965 = vmatmul.mubr.msk.f32.vlgmr.msra.gmra.mxu1 %vm484_vm0, %v568_v59 }
 0x21f   : > { %1967 = vmatprep.mubr.msk.f32.mxu1 %vm484_vm0, %v569_v60 }
 0x222   : > { %1968 = vmatmul.mubr.msk.f32.gmra.mxu1 %vm484_vm0, %v570_v61 }
 0x2de   : > { %v1966_v2 = vpop.f32.mrf.mxu1 }
 0x2df   : > { %v679_v3 = vadd.f32 %v1966_v2, %v583_v63  ;;  %v2217_v2 = vmov 8  }
 0x2e0   : > { %v673_v4 = vpop.f32.mrf.mxu1 }
 0x2e1   : > { %v706_v5 = vmul.f32 %v703_v1, %v679_v3  ;;  %v674_v6 = vadd.f32 %v673_v4, %v578_v62  ;;  %vm693_vm1 = vcmp.gt.f32.partialorder %v679_v3, 0.0 }
 0x2e2   : > { %v1969_v8 = vpop.f32.mrf.mxu1 }
 0x2e3   : > { %vm692_vm2 = vcmp.gt.f32.partialorder %v674_v6, 0.0  ;;  %v705_v9 = vmul.f32 %v703_v1, %v674_v6  ;;  %v689_v10 = vadd.f32 %v1969_v8, %v593_v7  ;;  %v2441_v12 = vsel %vm693_vm1, %v679_v3, %v706_v5 }
 0x2e4   : > { %v683_v11 = vpop.f32.mrf.mxu1  ;;  %v723_v19 = vmul.f32 %v2441_v12, %v2441_v12  ;;  %v2218_v3 = vmov 3  }
 0x2e5   : > { %v2443_v13 = vsel %vm692_vm2, %v674_v6, %v705_v9  ;;  %v708_v14 = vmul.f32 %v703_v1, %v689_v10  ;;  %v684_v15 = vadd.f32 %v683_v11, %v588_v0  ;;  %vm695_vm3 = vcmp.gt.f32.partialorder %v689_v10, 0.0 }
 0x2e6   : > { %v722_v16 = vmul.f32 %v2443_v13, %v2443_v13  ;;  %v713_v21 = vadd.f32 %v2441_v12, %v2443_v13  ;;  %v2215_v0 = vmov 7  }
 0x2e7   : > { %vm694_vm4 = vcmp.gt.f32.partialorder %v684_v15, 0.0  ;;  %v707_v17 = vmul.f32 %v703_v1, %v684_v15  ;;  %v2451_v22 = vsel %vm695_vm3, %v689_v10, %v708_v14  ;;  %v2216_v1 = vmov 6  }
 0x2e8   : > { %v726_v24 = vadd.f32 %v723_v19, %v722_v16  ;;  %v725_v27 = vmul.f32 %v2451_v22, %v2451_v22 }
 0x2e9   : > { %v2453_v23 = vsel %vm694_vm4, %v684_v15, %v707_v17 }
 0x2ea   : > { %v714_v25 = vadd.f32 %v713_v21, %v2453_v23  ;;  %v724_v26 = vmul.f32 %v2453_v23, %v2453_v23 }
 0x2ec   : > { %v727_v28 = vadd.f32 %v726_v24, %v724_v26  ;;  %v715_v29 = vadd.f32 %v714_v25, %v2451_v22 }
 0x2ee   : > { %v716_v30 = vrot.slane %v715_v29, 4  ;;  %v728_v31 = vadd.f32 %v727_v28, %v725_v27 }
 0x2f0   : > { %v717_v32 = vadd.f32 %v716_v30, %v715_v29  ;;  %v729_v33 = vrot.slane %v728_v31, 4 }
 0x2f2   : > { %v718_v34 = vrot.slane %v717_v32, 2  ;;  %v730_v35 = vadd.f32 %v729_v33, %v728_v31 }
 0x2f4   : > { %v719_v41 = vadd.f32 %v718_v34, %v717_v32  ;;  %v731_v42 = vrot.slane %v730_v35, 2 }
 0x2f6   : > { %v720_v43 = vrot.slane %v719_v41, 1  ;;  %v732_v44 = vadd.f32 %v731_v42, %v730_v35 }
 0x2f8   : > { %v721_v45 = vadd.f32 %v720_v43, %v719_v41  ;;  %v733_v46 = vrot.slane %v732_v44, 1 }
 0x2fa   : > { %735 = vadd.xlane.f32.xlu1 %v721_v45  ;;  %v734_v47 = vadd.f32 %v733_v46, %v732_v44  ;;  %v385_v44 = vlaneseq }
 0x2fc   : > { %738 = vadd.xlane.f32.xlu0 %v734_v47  ;;  %v2513_v46 = vand.u32 127, %v385_v44 }
 0x30b   : > { %779 = vperm.xlu1 %2083, %v2384_v36  }
 0x30f   : > { %783 = vperm.xlu1 %2083, %v2390_v37  }
 0x313   : > { %2084 = vset.pattern.permute.xlu1 %v2213_v20 }
 0x383   : > { %v736_v49 = vpop.xlane.xlu1 %735 }
 0x384   : > { %v2465_v50 = vmul.f32 0.00024414063, %v736_v49 }
 0x385   : > { %v739_v51 = vpop.xlane.xlu0 %738 }
 0x386   : > { %v740_v52 = vmul.f32 0.00024414063, %v739_v51  ;;  %v741_v53 = vmul.f32 %v2465_v50, %v2465_v50  ;;  %v746_v6 = vsub.f32 %v2443_v13, %v2465_v50  ;;  %v747_v9 = vsub.f32 %v2441_v12, %v2465_v50 }
 0x387   : > { %v780_v4 = vpop.permute.xlu1 %779  ;;  %v748_v17 = vsub.f32 %v2453_v23, %v2465_v50  ;;  %v749_v12 = vsub.f32 %v2451_v22, %v2465_v50  ;;  %v387_v50 = vadd.s32 4294967295, %v2513_v46 }
 0x388   : > { %v742_v54 = vsub.f32 %v740_v52, %v741_v53  ;;  %v393_v52 = vadd.s32 1, %v2513_v46 }
 0x389   : > { %vm388_vm5 = vcmp.ge.s32.totalorder %v387_v50, 0 }
 0x38a   : > { %v743_v56 = vmax.f32 %v742_v54, 0.0  ;;  %vm395_vm6 = vcmp.lt.s32.totalorder %v393_v52, 128 }
 0x38b   : > { %v784_v5 = vpop.permute.xlu1 %783 }
 0x38c   : > { %v744_v57 = vadd.f32 1e-08, %v743_v56  ;;  %v2221_v56 = vmov 0.0  }
 0x38e   : > { %2137 = vrsqrt.f32 %v744_v57  ;;  %v1877_v57 = vsel %vm388_vm5, 1.0, %v2221_v56 }
 0x39b   : > { %v2138_v59 = vpop.eup %2137 }
 0x39c   : > { %v751_v60 = vmul.f32 %v2138_v59, %v2390_v37  ;;  %v750_v61 = vmul.f32 %v2138_v59, %v2384_v36  ;;  %v753_v62 = vmul.f32 %v2138_v59, %v2408_v40  ;;  %v752_v63 = vmul.f32 %v2138_v59, %v2396_v38 }
 0x39d   : > { %v1878_v59 = vsel %vm395_vm6, 1.0, %v2221_v56 }
 0x39e   : > { %761 = vperm.xlu0 %2079, %v751_v60   ;;  %756 = vperm.xlu1 %2084, %v750_v61  }
 0x3a2   : > { %771 = vperm.xlu0 %2079, %v753_v62   ;;  %766 = vperm.xlu1 %2084, %v752_v63  }
 0x3a6   : > { %2086 = vset.pattern.permute.xlu0 %v2214_v48  ;;  %2085 = vset.pattern.permute.xlu1 %v2214_v48 }
 0x3a7   : > { %791 = vperm.xlu0 %2086, %v2408_v40   ;;  %787 = vperm.xlu1 %2085, %v2396_v38  }
 0x3ab   : > { %2088 = vset.pattern.permute.xlu0 %v2215_v0  ;;  %2087 = vset.pattern.permute.xlu1 %v2216_v1 }
 0x3ac   : > { %831 = vperm.xlu0 %2088, %v2384_v36   ;;  %811 = vperm.xlu1 %2087, %v2384_v36  }
 0x3b0   : > { %839 = vperm.xlu0 %2088, %v2396_v38   ;;  %815 = vperm.xlu1 %2087, %v2390_v37  }
 0x3b4   : > { %2089 = vset.pattern.permute.xlu1 %v2215_v0  ;;  %2092 = vset.pattern.permute.xlu0 %v2217_v2 }
 0x3b5   : > { %835 = vperm.xlu1 %2089, %v2390_v37   ;;  %871 = vperm.xlu0 %2092, %v2390_v37  }
 0x3b9   : > { %2090 = vset.pattern.permute.xlu1 %v2216_v1  ;;  %2093 = vset.pattern.permute.xlu0 %v2216_v1 }
 0x3ba   : > { %819 = vperm.xlu1 %2090, %v2396_v38   ;;  %823 = vperm.xlu0 %2093, %v2408_v40  }
 0x3be   : > { %2091 = vset.pattern.permute.xlu1 %v2217_v2  ;;  %2096 = vset.pattern.permute.xlu0 %v2218_v3 }
 0x3bf   : > { %867 = vperm.xlu1 %2091, %v2384_v36   ;;  %891 = vperm.xlu0 %2096, %v2384_v36  }
 0x3c3   : > { %2094 = vset.pattern.permute.xlu1 %v2215_v0  ;;  %2098 = vset.pattern.permute.xlu0 %v2213_v20 }
 0x3c4   : > { %843 = vperm.xlu1 %2094, %v2408_v40  }
 0x3c8   : > { %2095 = vset.pattern.permute.xlu1 %v2217_v2 }
 0x3c9   : > { %875 = vperm.xlu1 %2095, %v2396_v38  }
 0x3cd   : > { %879 = vperm.xlu1 %2095, %v2408_v40  }
 0x3d1   : > { %2097 = vset.pattern.permute.xlu1 %v2218_v3 }
 0x3d2   : > { %895 = vperm.xlu1 %2097, %v2390_v37  }
 0x3d6   : > { %899 = vperm.xlu1 %2097, %v2396_v38  }
 0x419   : > { %v762_v7 = vpop.permute.xlu0 %761  ;;  %v757_v8 = vpop.permute.xlu1 %756 }
 0x41a   : > { %v774_v10 = vmul.f32 %v757_v8, %v746_v6  ;;  %v775_v11 = vmul.f32 %v762_v7, %v747_v9 }
 0x41c   : > { %v2499_v14 = vadd.f32 %v780_v4, %v774_v10  ;;  %v795_v19 = vadd.f32 %v784_v5, %v775_v11 }
 0x41d   : > { %v767_v15 = vpop.permute.xlu1 %766  ;;  %v772_v16 = vpop.permute.xlu0 %771 }
 0x41e   : > { %798 = vrot.lane.b32.xlu1 %v2499_v14, %s2219_s15  ;;  %v776_v21 = vmul.f32 %v767_v15, %v748_v17  ;;  %v777_v26 = vmul.f32 %v772_v16, %v749_v12 }
 0x422   : > { %800 = vrot.lane.b32.xlu1 %v795_v19, %s2219_s15  ;;  %v788_v13 = vpop.permute.xlu1 %787  ;;  %v792_v25 = vpop.permute.xlu0 %791 }
 0x423   : > { %v796_v24 = vadd.f32 %v788_v13, %v776_v21  ;;  %v2507_v27 = vadd.f32 %v792_v25, %v777_v26 }
 0x425   : > { %802 = vrot.lane.b32.xlu0 %v796_v24, %s2219_s15 }
 0x426   : > { %854 = vrot.lane.b32.xlu1 %v2499_v14, %s2220_s16 }
 0x427   : > { %v812_v23 = vpop.permute.xlu1 %811  ;;  %v832_v33 = vpop.permute.xlu0 %831 }
 0x428   : > { %v846_v9 = vmul.f32 %v832_v33, %v2499_v14 }
 0x429   : > { %856 = vrot.lane.b32.xlu0 %v795_v19, %s2220_s16 }
 0x42a   : > { %804 = vrot.lane.b32.xlu1 %v2507_v27, %s2219_s15 }
 0x42b   : > { %v816_v22 = vpop.permute.xlu1 %815  ;;  %v840_v35 = vpop.permute.xlu0 %839 }
 0x42c   : > { %v848_v10 = vmul.f32 %v840_v35, %v796_v24 }
 0x42d   : > { %858 = vrot.lane.b32.xlu0 %v796_v24, %s2220_s16 }
 0x42e   : > { %860 = vrot.lane.b32.xlu1 %v2507_v27, %s2220_s16 }
 0x430   : > { %v836_v28 = vpop.permute.xlu1 %835  ;;  %v872_v42 = vpop.permute.xlu0 %871 }
 0x431   : > { %915 = vperm.xlu0 %2098, %v2402_v39   ;;  %v847_v11 = vmul.f32 %v836_v28, %v795_v19 }
 0x432   : > { %903 = vperm.xlu1 %2097, %v2408_v40  }
 0x435   : > { %v820_v29 = vpop.permute.xlu1 %819  ;;  %v824_v45 = vpop.permute.xlu0 %823 }
 0x43a   : > { %v868_v30 = vpop.permute.xlu1 %867  ;;  %v892_v49 = vpop.permute.xlu0 %891 }
 0x43f   : > { %v844_v31 = vpop.permute.xlu1 %843 }
 0x444   : > { %v876_v32 = vpop.permute.xlu1 %875 }
 0x448   : > { %v880_v34 = vpop.permute.xlu1 %879 }
 0x44d   : > { %v896_v41 = vpop.permute.xlu1 %895 }
 0x451   : > { %v900_v43 = vpop.permute.xlu1 %899 }
 0x490   : > { %v799_v47 = vpop.permute.xlu1 %798 }
 0x491   : > { %v806_v61 = vmul.f32 %v1877_v57, %v799_v47 }
 0x493   : > { %v826_v5 = vmul.f32 %v812_v23, %v806_v61 }
 0x494   : > { %v801_v51 = vpop.permute.xlu1 %800 }
 0x495   : > { %v807_v62 = vmul.f32 %v1877_v57, %v801_v51  ;;  %v850_v12 = vadd.f32 %v846_v9, %v826_v5 }
 0x497   : > { %v803_v53 = vpop.permute.xlu0 %802  ;;  %v827_v6 = vmul.f32 %v816_v22, %v807_v62  ;;  %v849_v22 = vmul.f32 %v844_v31, %v2507_v27 }
 0x498   : > { %v855_v54 = vpop.permute.xlu1 %854  ;;  %v808_v63 = vmul.f32 %v1877_v57, %v803_v53 }
 0x499   : > { %v862_v1 = vmul.f32 %v1878_v59, %v855_v54  ;;  %v851_v25 = vadd.f32 %v847_v11, %v827_v6 }
 0x49a   : > { %v828_v7 = vmul.f32 %v820_v29, %v808_v63 }
 0x49b   : > { %v857_v60 = vpop.permute.xlu0 %856  ;;  %v882_v16 = vmul.f32 %v868_v30, %v862_v1 }
 0x49c   : > { %v805_v0 = vpop.permute.xlu1 %804  ;;  %v863_v2 = vmul.f32 %v1878_v59, %v857_v60  ;;  %v852_v26 = vadd.f32 %v848_v10, %v828_v7 }
 0x49d   : > { %v809_v21 = vmul.f32 %v1877_v57, %v805_v0  ;;  %v886_v47 = vadd.f32 %v882_v16, %v850_v12 }
 0x49e   : > { %v883_v17 = vmul.f32 %v872_v42, %v863_v2 }
 0x49f   : > { %v859_v4 = vpop.permute.xlu0 %858  ;;  %v829_v51 = vmul.f32 %v824_v45, %v809_v21  ;;  %v906_v52 = vadd.f32 %v892_v49, %v886_v47  ;;  %v2223_v21 = vmov 4  }
 0x4a0   : > { %v864_v8 = vmul.f32 %v1878_v59, %v859_v4  ;;  %v861_v15 = vpop.permute.xlu1 %860  ;;  %v887_v50 = vadd.f32 %v883_v17, %v851_v25  ;;  %v2222_v17 = vmov 5   ;;  %2099 = vset.pattern.permute.xlu0 %v2223_v21 }
 0x4a1   : > { %v865_v44 = vmul.f32 %v1878_v59, %v861_v15  ;;  %v853_v19 = vadd.f32 %v849_v22, %v829_v51  ;;  %vm910_vm7 = vcmp.gt.f32.partialorder %v906_v52, 0.0  ;;  %2100 = vset.pattern.permute.xlu1 %v2222_v17 }
 0x4a2   : > { %v884_v13 = vmul.f32 %v876_v32, %v864_v8  ;;  %v907_v14 = vadd.f32 %v896_v41, %v887_v50 }
 0x4a3   : > { %v885_v29 = vmul.f32 %v880_v34, %v865_v44 }
 0x4a4   : > { %v888_v23 = vadd.f32 %v884_v13, %v852_v26  ;;  %vm911_vm8 = vcmp.gt.f32.partialorder %v907_v14, 0.0 }
 0x4a5   : > { %v889_v30 = vadd.f32 %v885_v29, %v853_v19  ;;  %v1016_v19 = vld [vmem:[%s2819_s7 + $0x8] sm:$0xff] }
 0x4a6   : > { %v908_v24 = vadd.f32 %v900_v43, %v888_v23 }
 0x4a8   : > { %vm912_vm9 = vcmp.gt.f32.partialorder %v908_v24, 0.0 }
 0x4ac   : > { %v916_v28 = vpop.permute.xlu0 %915 }
 0x4ad   : > { %v918_v33 = vmul.f32 %v916_v28, %v906_v52  ;;  %v919_v35 = vmul.f32 %v916_v28, %v907_v14  ;;  %v920_v32 = vmul.f32 %v916_v28, %v908_v24  ;;  %v904_v42 = vpop.permute.xlu1 %903 }
 0x4ae   : > { %v909_v53 = vadd.f32 %v904_v42, %v889_v30 }
 0x4af   : > { %v2521_v54 = vsel %vm910_vm7, %v906_v52, %v918_v33  ;;  %v2523_v45 = vsel %vm911_vm8, %v907_v14, %v919_v35  ;;  %v2525_v27 = vsel %vm912_vm9, %v908_v24, %v920_v32  ;;  %v1011_v24 = vld [vmem:[%s2818_s6] sm:$0xff] }
 0x4b0   : > { %v935_v31 = vmul.f32 %v2521_v54, %v2521_v54  ;;  %v936_v34 = vmul.f32 %v2523_v45, %v2523_v45  ;;  %v926_v41 = vadd.f32 %v2523_v45, %v2521_v54  ;;  %vm913_vm10 = vcmp.gt.f32.partialorder %v909_v53, 0.0  ;;  %1978 = vmatprep.mubr.msk.f32.mxu0 %vm1039_vm11, %v1011_v24 }
 0x4b1   : > { %v921_v43 = vmul.f32 %v916_v28, %v909_v53  ;;  %v937_v57 = vmul.f32 %v2525_v27, %v2525_v27  ;;  %v1015_v28 = vld [vmem:[%s2819_s7] sm:$0xff] }
 0x4b2   : > { %v927_v49 = vadd.f32 %v926_v41, %v2525_v27  ;;  %v939_v59 = vadd.f32 %v936_v34, %v935_v31 }
 0x4b3   : > { %v2536_v60 = vsel %vm913_vm10, %v909_v53, %v921_v43 }
 0x4b4   : > { %v928_v61 = vadd.f32 %v927_v49, %v2536_v60  ;;  %v938_v62 = vmul.f32 %v2536_v60, %v2536_v60  ;;  %v940_v63 = vadd.f32 %v939_v59, %v937_v57 }
 0x4b6   : > { %v929_v0 = vrot.slane %v928_v61, 4  ;;  %v941_v1 = vadd.f32 %v940_v63, %v938_v62 }
 0x4b8   : > { %v930_v2 = vadd.f32 %v929_v0, %v928_v61  ;;  %v942_v4 = vrot.slane %v941_v1, 4 }
 0x4ba   : > { %v931_v5 = vrot.slane %v930_v2, 2  ;;  %v943_v6 = vadd.f32 %v942_v4, %v941_v1  ;;  %v2224_v4 = vmov 9  }
 0x4bc   : > { %v932_v7 = vadd.f32 %v931_v5, %v930_v2  ;;  %v944_v8 = vrot.slane %v943_v6, 2  ;;  %v1892_v2 = vld [vmem:[%s2816_s4 + $0x20] sm:$0xff] }
 0x4bd   : > { %1988 = vmatprep.mubr.msk.f32.mxu1 %vm484_vm0, %v1892_v2 }
 0x4be   : > { %v933_v9 = vrot.slane %v932_v7, 1  ;;  %v945_v10 = vadd.f32 %v944_v8, %v943_v6 }
 0x4c0   : > { %v934_v11 = vadd.f32 %v933_v9, %v932_v7  ;;  %v946_v15 = vrot.slane %v945_v10, 1 }
 0x4c2   : > { %948 = vadd.xlane.f32.xlu0 %v934_v11  ;;  %v947_v16 = vadd.f32 %v946_v15, %v945_v10  ;;  %v1893_v15 = vld [vmem:[%s2816_s4 + $0x28] sm:$0xff] }
 0x4c4   : > { %951 = vadd.xlane.f32.xlu1 %v947_v16 }
 0x4d5   : > { %1004 = vperm.xlu1 %2100, %v2408_v40  }
 0x4d9   : > { %1000 = vperm.xlu1 %2100, %v2396_v38  }
 0x4dd   : > { %996 = vperm.xlu1 %2100, %v2390_v37  }
 0x4e1   : > { %2101 = vset.pattern.permute.xlu1 %v2223_v21 }
 0x54b   : > { %v949_v13 = vpop.xlane.xlu0 %948 }
 0x54c   : > { %v950_v12 = vmul.f32 0.00024414063, %v949_v13 }
 0x54d   : > { %v952_v25 = vpop.xlane.xlu1 %951 }
 0x54e   : > { %v953_v26 = vmul.f32 0.00024414063, %v952_v25  ;;  %v954_v44 = vmul.f32 %v950_v12, %v950_v12  ;;  %v962_v32 = vsub.f32 %v2536_v60, %v950_v12  ;;  %v961_v42 = vsub.f32 %v2525_v27, %v950_v12 }
 0x54f   : > { %v960_v49 = vsub.f32 %v2523_v45, %v950_v12  ;;  %v959_v60 = vsub.f32 %v2521_v54, %v950_v12  ;;  %v1012_v45 = vld [vmem:[%s2818_s6 + $0x8] sm:$0xff] }
 0x550   : > { %v955_v47 = vsub.f32 %v953_v26, %v954_v44 }
 0x551   : > { %v1005_v30 = vpop.permute.xlu1 %1004 }
 0x552   : > { %v956_v50 = vmax.f32 %v955_v47, 0.0 }
 0x554   : > { %v957_v51 = vadd.f32 1e-08, %v956_v50 }
 0x555   : > { %v1001_v33 = vpop.permute.xlu1 %1000 }
 0x556   : > { %2139 = vrsqrt.f32 %v957_v51 }
 0x559   : > { %v997_v35 = vpop.permute.xlu1 %996 }
 0x563   : > { %v2140_v23 = vpop.eup %2139 }
 0x564   : > { %v966_v22 = vmul.f32 %v2140_v23, %v2408_v40  ;;  %v965_v29 = vmul.f32 %v2140_v23, %v2396_v38  ;;  %v964_v52 = vmul.f32 %v2140_v23, %v2390_v37  ;;  %v963_v14 = vmul.f32 %v2140_v23, %v2384_v36 }
 0x566   : > { %984 = vperm.xlu0 %2099, %v966_v22   ;;  %979 = vperm.xlu1 %2101, %v965_v29  }
 0x56a   : > { %974 = vperm.xlu1 %2101, %v964_v52   ;;  %2103 = vset.pattern.permute.xlu0 %v2212_v18 }
 0x56b   : > { %1026 = vperm.xlu0 %2103, %v1016_v19  }
 0x56e   : > { %969 = vperm.xlu1 %2101, %v963_v14  }
 0x56f   : > { %2106 = vset.pattern.permute.xlu0 %v2224_v4 }
 0x570   : > { %1149 = vperm.xlu0 %2106, %v2390_v37  }
 0x572   : > { %2102 = vset.pattern.permute.xlu1 %v2222_v17 }
 0x573   : > { %992 = vperm.xlu1 %2102, %v2384_v36  }
 0x574   : > { %1157 = vperm.xlu0 %2106, %v2408_v40  }
 0x577   : > { %2104 = vset.pattern.permute.xlu1 %v2212_v18 }
 0x578   : > { %1021 = vperm.xlu1 %2104, %v1015_v28  }
 0x57c   : > { %2105 = vset.pattern.permute.xlu1 %v2224_v4 }
 0x57d   : > { %1145 = vperm.xlu1 %2105, %v2384_v36  }
 0x581   : > { %1153 = vperm.xlu1 %2105, %v2396_v38  }
 0x585   : > { %2107 = vset.pattern.permute.xlu1 %v2214_v48  ;;  %v1894_v48 = vld [vmem:[%s2816_s4 + $0x30] sm:$0xff] }
 0x586   : > { %1262 = vperm.xlu1 %2107, %v2402_v39  }
 0x5e1   : > { %v985_v53 = vpop.permute.xlu0 %984  ;;  %v980_v31 = vpop.permute.xlu1 %979 }
 0x5e2   : > { %v990_v34 = vmul.f32 %v985_v53, %v962_v32  ;;  %v989_v41 = vmul.f32 %v980_v31, %v961_v42 }
 0x5e4   : > { %v1010_v43 = vadd.f32 %v1005_v30, %v990_v34  ;;  %v1009_v59 = vadd.f32 %v1001_v33, %v989_v41 }
 0x5e5   : > { %v975_v57 = vpop.permute.xlu1 %974 }
 0x5e6   : > { %v988_v61 = vmul.f32 %v975_v57, %v960_v49  ;;  %1970 = vmatprep.subr.mxu0 %v1010_v43  ;;  %v1027_v54 = vpop.permute.xlu0 %1026 }
 0x5e7   : > { %1971 = vmatpush3.msra.mxu0 %v1010_v43 }
 0x5e8   : > { %v1008_v62 = vadd.f32 %v997_v35, %v988_v61  ;;  %1972 = vmatprep.subr.mxu0 %v1009_v59 }
 0x5e9   : > { %1973 = vmatpush3.msra.mxu0 %v1009_v59  ;;  %v970_v63 = vpop.permute.xlu1 %969 }
 0x5ea   : > { %1974 = vmatprep.subr.mxu0 %v1008_v62  ;;  %v987_v27 = vmul.f32 %v970_v63, %v959_v60 }
 0x5eb   : > { %1975 = vmatpush3.msra.mxu0 %v1008_v62  ;;  %v1150_v17 = vpop.permute.xlu0 %1149 }
 0x5ee   : > { %v993_v0 = vpop.permute.xlu1 %992 }
 0x5ef   : > { %v1007_v1 = vadd.f32 %v993_v0, %v987_v27  ;;  %v1158_v44 = vpop.permute.xlu0 %1157 }
 0x5f1   : > { %1976 = vmatprep.subr.mxu0 %v1007_v1 }
 0x5f2   : > { %1977 = vmatpush3.msra.mxu0 %v1007_v1 }
 0x5f3   : > { %1979 = vmatmul.mubr.msk.f32.vlgmr.msra.gmra.mxu0 %vm1039_vm11, %v1012_v45  ;;  %v1022_v6 = vpop.permute.xlu1 %1021 }
 0x6b3   : > { %v1980_v5 = vpop.f32.mrf.mxu0 }
 0x6b4   : > { %v1124_v7 = vadd.f32 %v1980_v5, %v1027_v54  ;;  %v2225_v5 = vmov 11  }
 0x6b5   : > { %v1118_v8 = vpop.f32.mrf.mxu0  ;;  %2109 = vset.pattern.permute.xlu1 %v2225_v5 }
 0x6b6   : > { %v1138_v9 = vadd.f32 %v1124_v7, %v2421_v55  ;;  %v1119_v10 = vadd.f32 %v1118_v8, %v1022_v6  ;;  %v1895_v55 = vld [vmem:[%s2816_s4 + $0x38] sm:$0xff]  ;;  %v2226_v6 = vmov 10  }
 0x6b7   : > { %2108 = vset.pattern.permute.xlu0 %v2226_v6 }
 0x6b8   : > { %v1137_v11 = vadd.f32 %v1119_v10, %v2423_v58  ;;  %1984 = vmatprep.subr.mxu1 %v1138_v9  ;;  %v1146_v58 = vpop.permute.xlu1 %1145 }
 0x6b9   : > { %1985 = vmatpush3.msra.mxu1 %v1138_v9 }
 0x6ba   : > { %1986 = vmatprep.subr.mxu1 %v1137_v11 }
 0x6bb   : > { %1987 = vmatpush3.msra.mxu1 %v1137_v11 }
 0x6bc   : > { %1989 = vmatmul.mubr.msk.f32.vlgmr.msra.gmra.mxu1 %vm484_vm0, %v1893_v15  ;;  %v1154_v16 = vpop.permute.xlu1 %1153 }
 0x6bd   : > { %1991 = vmatprep.mubr.msk.f32.mxu1 %vm484_vm0, %v1894_v48 }
 0x6c0   : > { %1992 = vmatmul.mubr.msk.f32.gmra.mxu1 %vm484_vm0, %v1895_v55  ;;  %v1263_v12 = vpop.permute.xlu1 %1262 }
 0x77c   : > { %v1990_v13 = vpop.f32.mrf.mxu1 }
 0x77d   : > { %v1244_v25 = vadd.f32 %v1990_v13, %v1150_v17 }
 0x77e   : > { %v1238_v26 = vpop.f32.mrf.mxu1 }
 0x77f   : > { %v1239_v47 = vadd.f32 %v1238_v26, %v1146_v58  ;;  %v1266_v50 = vmul.f32 %v1263_v12, %v1244_v25  ;;  %vm1258_vm12 = vcmp.gt.f32.partialorder %v1244_v25, 0.0  ;;  %v2228_v26 = vmov 16  }
 0x780   : > { %v1993_v51 = vpop.f32.mrf.mxu1 }
 0x781   : > { %vm1257_vm13 = vcmp.gt.f32.partialorder %v1239_v47, 0.0  ;;  %v1265_v23 = vmul.f32 %v1263_v12, %v1239_v47  ;;  %v1254_v22 = vadd.f32 %v1993_v51, %v1158_v44  ;;  %v2597_v14 = vsel %vm1258_vm12, %v1244_v25, %v1266_v50 }
 0x782   : > { %v1248_v29 = vpop.f32.mrf.mxu1  ;;  %v1283_v33 = vmul.f32 %v2597_v14, %v2597_v14  ;;  %v2229_v44 = vmov 17  }
 0x783   : > { %v2595_v52 = vsel %vm1257_vm13, %v1239_v47, %v1265_v23  ;;  %v1268_v24 = vmul.f32 %v1263_v12, %v1254_v22  ;;  %v1249_v19 = vadd.f32 %v1248_v29, %v1154_v16  ;;  %vm1260_vm14 = vcmp.gt.f32.partialorder %v1254_v22, 0.0 }
 0x784   : > { %v1282_v28 = vmul.f32 %v2595_v52, %v2595_v52  ;;  %v1273_v35 = vadd.f32 %v2597_v14, %v2595_v52  ;;  %v2230_v47 = vmov 12  }
 0x785   : > { %vm1259_vm15 = vcmp.gt.f32.partialorder %v1249_v19, 0.0  ;;  %v1267_v30 = vmul.f32 %v1263_v12, %v1249_v19  ;;  %v2605_v32 = vsel %vm1260_vm14, %v1254_v22, %v1268_v24  ;;  %v2227_v12 = vmov 15  }
 0x786   : > { %v1286_v34 = vadd.f32 %v1283_v33, %v1282_v28  ;;  %v1285_v41 = vmul.f32 %v2605_v32, %v2605_v32 }
 0x787   : > { %v2607_v42 = vsel %vm1259_vm15, %v1249_v19, %v1267_v30 }
 0x788   : > { %v1274_v53 = vadd.f32 %v1273_v35, %v2607_v42  ;;  %v1284_v31 = vmul.f32 %v2607_v42, %v2607_v42 }
 0x78a   : > { %v1287_v43 = vadd.f32 %v1286_v34, %v1284_v31  ;;  %v1275_v49 = vadd.f32 %v1274_v53, %v2605_v32 }
 0x78c   : > { %v1276_v57 = vrot.slane %v1275_v49, 4  ;;  %v1288_v59 = vadd.f32 %v1287_v43, %v1285_v41 }
 0x78e   : > { %v1277_v61 = vadd.f32 %v1276_v57, %v1275_v49  ;;  %v1289_v62 = vrot.slane %v1288_v59, 4 }
 0x790   : > { %v1278_v63 = vrot.slane %v1277_v61, 2  ;;  %v1290_v60 = vadd.f32 %v1289_v62, %v1288_v59 }
 0x792   : > { %v1279_v27 = vadd.f32 %v1278_v63, %v1277_v61  ;;  %v1291_v0 = vrot.slane %v1290_v60, 2 }
 0x794   : > { %v1280_v1 = vrot.slane %v1279_v27, 1  ;;  %v1292_v45 = vadd.f32 %v1291_v0, %v1290_v60 }
 0x796   : > { %v1281_v2 = vadd.f32 %v1280_v1, %v1279_v27  ;;  %v1293_v4 = vrot.slane %v1292_v45, 1  ;;  %v399_v1 = vadd.s32 4294967294, %v2513_v46 }
 0x798   : > { %1295 = vadd.xlane.f32.xlu1 %v1281_v2  ;;  %v1294_v54 = vadd.f32 %v1293_v4, %v1292_v45  ;;  %vm400_vm1 = vcmp.ge.s32.totalorder %v399_v1, 0  ;;  %v405_v4 = vadd.s32 2, %v2513_v46 }
 0x79a   : > { %1298 = vadd.xlane.f32.xlu0 %v1294_v54  ;;  %v1879_v54 = vsel %vm400_vm1, 1.0, %v2221_v56  ;;  %vm407_vm2 = vcmp.lt.s32.totalorder %v405_v4, 128 }
 0x7a9   : > { %1339 = vperm.xlu1 %2109, %v2384_v36  }
 0x7ad   : > { %1343 = vperm.xlu1 %2109, %v2390_v37  }
 0x7b1   : > { %1347 = vperm.xlu1 %2109, %v2396_v38  }
 0x7b5   : > { %2110 = vset.pattern.permute.xlu1 %v2226_v6 }
 0x821   : > { %v1296_v7 = vpop.xlane.xlu1 %1295 }
 0x822   : > { %v2618_v8 = vmul.f32 0.00024414063, %v1296_v7 }
 0x823   : > { %v1299_v9 = vpop.xlane.xlu0 %1298 }
 0x824   : > { %v1300_v10 = vmul.f32 0.00024414063, %v1299_v9  ;;  %v1301_v11 = vmul.f32 %v2618_v8, %v2618_v8  ;;  %v1306_v22 = vsub.f32 %v2595_v52, %v2618_v8  ;;  %v1309_v52 = vsub.f32 %v2605_v32, %v2618_v8 }
 0x825   : > { %v1340_v50 = vpop.permute.xlu1 %1339 }
 0x826   : > { %v1302_v15 = vsub.f32 %v1300_v10, %v1301_v11 }
 0x828   : > { %v1303_v48 = vmax.f32 %v1302_v15, 0.0 }
 0x829   : > { %v1344_v51 = vpop.permute.xlu1 %1343 }
 0x82a   : > { %v1304_v55 = vadd.f32 1e-08, %v1303_v48 }
 0x82c   : > { %2141 = vrsqrt.f32 %v1304_v55 }
 0x82d   : > { %v1348_v23 = vpop.permute.xlu1 %1347 }
 0x839   : > { %v2142_v58 = vpop.eup %2141 }
 0x83a   : > { %v1311_v16 = vmul.f32 %v2142_v58, %v2390_v37  ;;  %v1310_v17 = vmul.f32 %v2142_v58, %v2384_v36  ;;  %v1312_v13 = vmul.f32 %v2142_v58, %v2396_v38  ;;  %v1313_v25 = vmul.f32 %v2142_v58, %v2408_v40 }
 0x83c   : > { %1321 = vperm.xlu1 %2110, %v1311_v16   ;;  %1316 = vperm.xlu0 %2108, %v1310_v17  }
 0x840   : > { %1326 = vperm.xlu1 %2110, %v1312_v13   ;;  %2112 = vset.pattern.permute.xlu0 %v2227_v12 }
 0x841   : > { %1371 = vperm.xlu0 %2112, %v2384_v36  }
 0x844   : > { %1331 = vperm.xlu1 %2110, %v1313_v25  }
 0x845   : > { %2115 = vset.pattern.permute.xlu0 %v2228_v26 }
 0x846   : > { %1395 = vperm.xlu0 %2115, %v2390_v37  }
 0x848   : > { %2111 = vset.pattern.permute.xlu1 %v2225_v5 }
 0x849   : > { %1351 = vperm.xlu1 %2111, %v2408_v40  }
 0x84a   : > { %1403 = vperm.xlu0 %2115, %v2408_v40  }
 0x84d   : > { %2113 = vset.pattern.permute.xlu1 %v2227_v12 }
 0x84e   : > { %1375 = vperm.xlu1 %2113, %v2390_v37   ;;  %2120 = vset.pattern.permute.xlu0 %v2229_v44 }
 0x84f   : > { %1427 = vperm.xlu0 %2120, %v2384_v36  }
 0x852   : > { %2114 = vset.pattern.permute.xlu1 %v2228_v26 }
 0x853   : > { %1391 = vperm.xlu1 %2114, %v2384_v36   ;;  %1439 = vperm.xlu0 %2120, %v2408_v40  }
 0x857   : > { %2116 = vset.pattern.permute.xlu1 %v2227_v12  ;;  %2123 = vset.pattern.permute.xlu0 %v2230_v47 }
 0x858   : > { %1379 = vperm.xlu1 %2116, %v2396_v38   ;;  %1459 = vperm.xlu0 %2123, %v2396_v38  }
 0x85c   : > { %2117 = vset.pattern.permute.xlu1 %v2228_v26 }
 0x85d   : > { %1399 = vperm.xlu1 %2117, %v2396_v38  }
 0x861   : > { %2118 = vset.pattern.permute.xlu1 %v2229_v44 }
 0x862   : > { %1431 = vperm.xlu1 %2118, %v2390_v37  }
 0x866   : > { %2119 = vset.pattern.permute.xlu1 %v2227_v12 }
 0x867   : > { %1383 = vperm.xlu1 %2119, %v2408_v40   ;;  %v1307_v40 = vsub.f32 %v2597_v14, %v2618_v8 }
 0x86b   : > { %2121 = vset.pattern.permute.xlu1 %v2229_v44 }
 0x86c   : > { %1435 = vperm.xlu1 %2121, %v2396_v38  }
 0x870   : > { %2122 = vset.pattern.permute.xlu1 %v2230_v47 }
 0x871   : > { %1451 = vperm.xlu1 %2122, %v2384_v36  }
 0x875   : > { %1455 = vperm.xlu1 %2122, %v2390_v37   ;;  %v1308_v37 = vsub.f32 %v2607_v42, %v2618_v8  ;;  %v2658_v42 = vld [vmem:[%s2817_s5 + $0x18] sm:$0xff]  ;;  %v1880_v8 = vsel %vm407_vm2, 1.0, %v2221_v56 }
 0x879   : > { %2124 = vset.pattern.permute.xlu1 %v2218_v3 }
 0x87a   : > { %1475 = vperm.xlu1 %2124, %v2402_v39  }
 0x8b7   : > { %v1317_v29 = vpop.permute.xlu0 %1316  ;;  %v1322_v38 = vpop.permute.xlu1 %1321 }
 0x8b8   : > { %v1334_v24 = vmul.f32 %v1317_v29, %v1306_v22  ;;  %v1335_v19 = vmul.f32 %v1322_v38, %v1307_v40 }
 0x8ba   : > { %v1354_v36 = vadd.f32 %v1340_v50, %v1334_v24  ;;  %v1355_v28 = vadd.f32 %v1344_v51, %v1335_v19 }
 0x8bb   : > { %v1327_v3 = vpop.permute.xlu1 %1326 }
 0x8bc   : > { %v1336_v39 = vmul.f32 %v1327_v3, %v1308_v37  ;;  %1358 = vrot.lane.b32.xlu1 %v1354_v36, %s2231_s13  ;;  %1360 = vrot.lane.b32.xlu0 %v1355_v28, %s2231_s13  ;;  %v1372_v43 = vpop.permute.xlu0 %1371 }
 0x8be   : > { %v1356_v30 = vadd.f32 %v1348_v23, %v1336_v39 }
 0x8bf   : > { %v1332_v33 = vpop.permute.xlu1 %1331 }
 0x8c0   : > { %1414 = vrot.lane.b32.xlu0 %v1354_v36, %s2232_s14  ;;  %1362 = vrot.lane.b32.xlu1 %v1356_v30, %s2231_s13  ;;  %v1337_v14 = vmul.f32 %v1332_v33, %v1309_v52 }
 0x8c1   : > { %v1396_v57 = vpop.permute.xlu0 %1395 }
 0x8c2   : > { %v1407_v12 = vmul.f32 %v1396_v57, %v1355_v28 }
 0x8c4   : > { %1416 = vrot.lane.b32.xlu1 %v1355_v28, %s2232_s14  ;;  %v1352_v35 = vpop.permute.xlu1 %1351 }
 0x8c5   : > { %v2652_v53 = vadd.f32 %v1352_v35, %v1337_v14  ;;  %v1404_v61 = vpop.permute.xlu0 %1403 }
 0x8c7   : > { %1364 = vrot.lane.b32.xlu0 %v2652_v53, %s2231_s13  ;;  %v1409_v52 = vmul.f32 %v1404_v61, %v2652_v53  ;;  %s1916_s13 = sshll.u32 %s2319_s21, 8  ;;  %s2150_s21 = scalar_lea.vmem %s2765_s12, 256 }
 0x8c8   : > { %1418 = vrot.lane.b32.xlu1 %v1356_v30, %s2232_s14  ;;  %s2770_s16 = scalar_lea.hbm %s2823_s11, %s1916_s13  ;;  %p2151_p11 = scmp.ne.s32.totalorder %s2765_s12, %s2150_s21 }
 0x8c9   : > { %v1376_v31 = vpop.permute.xlu1 %1375  ;;  %p2158_p1 = scmp.lt.s32.totalorder %s2156_s0, %s2150_s21 }
 0x8ca   : > { %v1428_v63 = vpop.permute.xlu0 %1427  ;;  %p2152_p12 = pnand %p2151_p11, %p2336_p5 }
 0x8cb   : > { %1463 = vperm.xlu0 %2123, %v2658_v42   ;;  %p2159_p2 = por %p2158_p1, %p2157_p0 }
 0x8cc   : > { %1420 = vrot.lane.b32.xlu1 %v2652_v53, %s2232_s14  ;;  %p2153_p13 = pneg %p2152_p12 }
 0x8ce   : > { %v1392_v34 = vpop.permute.xlu1 %1391  ;;  %v1440_v27 = vpop.permute.xlu0 %1439  ;;  %p2160_p3 = pnand %p2159_p2, %p2153_p13 }
 0x8cf   : > { %v1406_v55 = vmul.f32 %v1392_v34, %v1354_v36 }
 0x8d3   : > { %v1380_v32 = vpop.permute.xlu1 %1379  ;;  %v1460_v45 = vpop.permute.xlu0 %1459 }
 0x8d8   : > { %v1400_v41 = vpop.permute.xlu1 %1399 }
 0x8d9   : > { %v1408_v56 = vmul.f32 %v1400_v41, %v1356_v30 }
 0x8dd   : > { %v1432_v49 = vpop.permute.xlu1 %1431 }
 0x8e2   : > { %v1384_v59 = vpop.permute.xlu1 %1383 }
 0x8e7   : > { %v1436_v62 = vpop.permute.xlu1 %1435 }
 0x8ec   : > { %v1452_v60 = vpop.permute.xlu1 %1451 }
 0x8f0   : > { %v1456_v0 = vpop.permute.xlu1 %1455 }
 0x8f5   : > { %v1476_v2 = vpop.permute.xlu1 %1475 }
 0x92e   : > { %v1361_v5 = vpop.permute.xlu0 %1360  ;;  %v1359_v6 = vpop.permute.xlu1 %1358 }
 0x92f   : > { %v1366_v7 = vmul.f32 %v1879_v54, %v1359_v6  ;;  %v1367_v9 = vmul.f32 %v1879_v54, %v1361_v5 }
 0x931   : > { %v1386_v15 = vmul.f32 %v1372_v43, %v1366_v7  ;;  %v1387_v58 = vmul.f32 %v1376_v31, %v1367_v9 }
 0x932   : > { %v1415_v10 = vpop.permute.xlu0 %1414  ;;  %v1363_v11 = vpop.permute.xlu1 %1362 }
 0x933   : > { %v1422_v48 = vmul.f32 %v1880_v8, %v1415_v10  ;;  %v1368_v17 = vmul.f32 %v1879_v54, %v1363_v11  ;;  %v1410_v46 = vadd.f32 %v1406_v55, %v1386_v15  ;;  %v1411_v26 = vadd.f32 %v1407_v12, %v1387_v58 }
 0x934   : > { %v2234_v12 = vmov 13  }
 0x935   : > { %v1442_v16 = vmul.f32 %v1428_v63, %v1422_v48  ;;  %v1388_v47 = vmul.f32 %v1380_v32, %v1368_v17  ;;  %v2233_v17 = vmov 14   ;;  %2125 = vset.pattern.permute.xlu0 %v2234_v12 }
 0x936   : > { %v1417_v13 = vpop.permute.xlu1 %1416  ;;  %2126 = vset.pattern.permute.xlu1 %v2233_v17 }
 0x937   : > { %v1423_v25 = vmul.f32 %v1880_v8, %v1417_v13  ;;  %v1446_v44 = vadd.f32 %v1442_v16, %v1410_v46  ;;  %v1412_v24 = vadd.f32 %v1408_v56, %v1388_v47  ;;  %v2146_v13 = vld [vmem:[%s2817_s5 + $0x10] sm:$0xff]  ;;  %v2147_v46 = vld [vmem:[%s2817_s5 + $0x8] sm:$0xff] }
 0x939   : > { %v1443_v50 = vmul.f32 %v1432_v49, %v1423_v25  ;;  %v1365_v51 = vpop.permute.xlu0 %1364  ;;  %v1466_v38 = vadd.f32 %v1452_v60, %v1446_v44 }
 0x93a   : > { %v1419_v23 = vpop.permute.xlu1 %1418  ;;  %v1369_v40 = vmul.f32 %v1879_v54, %v1365_v51 }
 0x93b   : > { %v1447_v22 = vadd.f32 %v1443_v50, %v1411_v26  ;;  %v1424_v29 = vmul.f32 %v1880_v8, %v1419_v23  ;;  %v1478_v14 = vmul.f32 %v1476_v2, %v1466_v38  ;;  %vm1470_vm4 = vcmp.gt.f32.partialorder %v1466_v38, 0.0 }
 0x93c   : > { %v1389_v39 = vmul.f32 %v1384_v59, %v1369_v40 }
 0x93d   : > { %v1467_v19 = vadd.f32 %v1456_v0, %v1447_v22  ;;  %v1444_v36 = vmul.f32 %v1436_v62, %v1424_v29  ;;  %v2669_v41 = vsel %vm1470_vm4, %v1466_v38, %v1478_v14 }
 0x93e   : > { %v1421_v37 = vpop.permute.xlu1 %1420  ;;  %v1413_v32 = vadd.f32 %v1409_v52, %v1389_v39  ;;  %v1495_v53 = vmul.f32 %v2669_v41, %v2669_v41  ;;  %v1017_v39 = vld [vmem:[%s2819_s7 + $0x10] sm:$0xff] }
 0x93f   : > { %v1479_v3 = vmul.f32 %v1476_v2, %v1467_v19  ;;  %v1448_v28 = vadd.f32 %v1444_v36, %v1412_v24  ;;  %v1425_v33 = vmul.f32 %v1880_v8, %v1421_v37  ;;  %vm1471_vm3 = vcmp.gt.f32.partialorder %v1467_v19, 0.0  ;;  %v1013_v24 = vld [vmem:[%s2818_s6 + $0x10] sm:$0xff]  ;;  %v2148_v36 = vld [vmem:[%s2817_s5] sm:$0xff] }
 0x940   : > { %1981 = vmatprep.mubr.msk.f32.mxu0 %vm1039_vm11, %v1013_v24  ;;  %v1900_v37 = vld [vmem:[%s2818_s6 + $0x20] sm:$0xff] }
 0x941   : > { %v1468_v35 = vadd.f32 %v1460_v45, %v1448_v28  ;;  %v1445_v31 = vmul.f32 %v1440_v27, %v1425_v33  ;;  %v2667_v30 = vsel %vm1471_vm3, %v1467_v19, %v1479_v3  ;;  %v1014_v19 = vld [vmem:[%s2818_s6 + $0x18] sm:$0xff]  ;;  %v2149_v28 = vld [vmem:[%s2822_s10] ss:$0 sm:$0xff] }
 0x942   : > { %v1496_v57 = vmul.f32 %v2667_v30, %v2667_v30  ;;  %v1486_v61 = vadd.f32 %v2667_v30, %v2669_v41  ;;  %1982 = vmatmul.mubr.msk.f32.gmra.mxu0 %vm1039_vm11, %v1014_v19  ;;  %v1018_v3 = vld [vmem:[%s2819_s7 + $0x18] sm:$0xff] }
 0x943   : > { %vm1472_vm5 = vcmp.gt.f32.partialorder %v1468_v35, 0.0  ;;  %v1480_v34 = vmul.f32 %v1476_v2, %v1468_v35  ;;  %v1449_v49 = vadd.f32 %v1445_v31, %v1413_v32  ;;  %2002 = vmatprep.mubr.msk.f32.mxu0 %vm1039_vm11, %v1900_v37 }
 0x944   : > { %v1499_v0 = vadd.f32 %v1496_v57, %v1495_v53 }
 0x945   : > { %v2671_v43 = vsel %vm1472_vm5, %v1468_v35, %v1480_v34 }
 0x946   : > { %v1464_v59 = vpop.permute.xlu0 %1463  ;;  %v1497_v63 = vmul.f32 %v2671_v43, %v2671_v43  ;;  %v1487_v27 = vadd.f32 %v1486_v61, %v2671_v43 }
 0x947   : > { %v1469_v62 = vadd.f32 %v1464_v59, %v1449_v49 }
 0x948   : > { %v1500_v54 = vadd.f32 %v1499_v0, %v1497_v63  ;;  %v1902_v0 = vld [vmem:[%s2818_s6 + $0x30] sm:$0xff] }
 0x949   : > { %vm1473_vm6 = vcmp.gt.f32.partialorder %v1469_v62, 0.0  ;;  %v1481_v60 = vmul.f32 %v1476_v2, %v1469_v62 }
 0x94b   : > { %v2682_v1 = vsel %vm1473_vm6, %v1469_v62, %v1481_v60 }
 0x94c   : > { %v1488_v45 = vadd.f32 %v1487_v27, %v2682_v1  ;;  %v1498_v4 = vmul.f32 %v2682_v1, %v2682_v1 }
 0x94e   : > { %v1489_v5 = vrot.slane %v1488_v45, 4  ;;  %v1501_v6 = vadd.f32 %v1500_v54, %v1498_v4  ;;  %v1700_v4 = vld [vmem:[%s2821_s9 + $0x8] sm:$0xff] }
 0x950   : > { %v1490_v7 = vadd.f32 %v1489_v5, %v1488_v45  ;;  %v1502_v8 = vrot.slane %v1501_v6, 4  ;;  %v1699_v45 = vld [vmem:[%s2821_s9] sm:$0xff] }
 0x952   : > { %v1491_v9 = vrot.slane %v1490_v7, 2  ;;  %v1503_v10 = vadd.f32 %v1502_v8, %v1501_v6 }
 0x954   : > { %v1492_v11 = vadd.f32 %v1491_v9, %v1490_v7  ;;  %v1504_v15 = vrot.slane %v1503_v10, 2 }
 0x956   : > { %v1493_v2 = vrot.slane %v1492_v11, 1  ;;  %v1505_v48 = vadd.f32 %v1504_v15, %v1503_v10 }
 0x958   : > { %v1494_v55 = vadd.f32 %v1493_v2, %v1492_v11  ;;  %v1506_v58 = vrot.slane %v1505_v48, 1 }
 0x95a   : > { %1508 = vadd.xlane.f32.xlu1 %v1494_v55  ;;  %v1507_v16 = vadd.f32 %v1506_v58, %v1505_v48 }
 0x95c   : > { %1511 = vadd.xlane.f32.xlu0 %v1507_v16 }
 0x96b   : > { %1564 = vperm.xlu1 %2126, %v2658_v42  }
 0x96f   : > { %1560 = vperm.xlu1 %2126, %v2146_v13  }
 0x973   : > { %1556 = vperm.xlu1 %2126, %v2147_v46  }
 0x977   : > { %2127 = vset.pattern.permute.xlu1 %v2234_v12 }
 0x9e3   : > { %v1509_v25 = vpop.xlane.xlu1 %1508 }
 0x9e4   : > { %v2694_v26 = vmul.f32 0.00024414063, %v1509_v25 }
 0x9e5   : > { %v1512_v44 = vpop.xlane.xlu0 %1511 }
 0x9e6   : > { %v1513_v47 = vmul.f32 0.00024414063, %v1512_v44  ;;  %v1514_v50 = vmul.f32 %v2694_v26, %v2694_v26  ;;  %v1522_v35 = vsub.f32 %v2682_v1, %v2694_v26  ;;  %v1697_v1 = vld [vmem:[%s2820_s8] sm:$0xff] }
 0x9e7   : > { %v1565_v33 = vpop.permute.xlu1 %1564  ;;  %2012 = vmatprep.mubr.msk.f32.mxu1 %vm484_vm0, %v1697_v1 }
 0x9e8   : > { %v1515_v51 = vsub.f32 %v1513_v47, %v1514_v50  ;;  %v1698_v47 = vld [vmem:[%s2820_s8 + $0x8] sm:$0xff] }
 0x9ea   : > { %v1516_v23 = vmax.f32 %v1515_v51, 0.0 }
 0x9eb   : > { %v1561_v52 = vpop.permute.xlu1 %1560 }
 0x9ec   : > { %v1517_v56 = vadd.f32 1e-08, %v1516_v23 }
 0x9ee   : > { %2143 = vrsqrt.f32 %v1517_v56 }
 0x9ef   : > { %v1557_v14 = vpop.permute.xlu1 %1556 }
 0x9fb   : > { %v2144_v22 = vpop.eup %2143 }
 0x9fc   : > { %v1526_v40 = vmul.f32 %v2658_v42, %v2144_v22  ;;  %v1525_v29 = vmul.f32 %v2146_v13, %v2144_v22  ;;  %v1524_v38 = vmul.f32 %v2147_v46, %v2144_v22  ;;  %v1523_v42 = vmul.f32 %v2148_v36, %v2144_v22 }
 0x9fe   : > { %1544 = vperm.xlu0 %2125, %v1526_v40   ;;  %1539 = vperm.xlu1 %2127, %v1525_v29  }
 0xa02   : > { %1534 = vperm.xlu1 %2127, %v1524_v38   ;;  %2130 = vset.pattern.permute.xlu0 %v2213_v20  ;;  %v1983_v5 = vpop.f32.mrf.mxu0 }
 0xa03   : > { %1587 = vperm.xlu0 %2130, %v1018_v3  }
 0xa04   : > { %v1128_v6 = vpop.f32.mrf.mxu0 }
 0xa06   : > { %1529 = vperm.xlu1 %2127, %v1523_v42  }
 0xa07   : > { %2132 = vset.pattern.permute.xlu0 %v2223_v21  ;;  %v1521_v21 = vsub.f32 %v2671_v43, %v2694_v26  ;;  %v1519_v43 = vsub.f32 %v2669_v41, %v2694_v26  ;;  %v1903_v41 = vld [vmem:[%s2818_s6 + $0x38] sm:$0xff] }
 0xa08   : > { %1690 = vperm.xlu0 %2132, %v2149_v28  }
 0xa0a   : > { %2128 = vset.pattern.permute.xlu1 %v2233_v17 }
 0xa0b   : > { %1552 = vperm.xlu1 %2128, %v2148_v36  }
 0xa0c   : > { %2134 = vset.pattern.permute.xlu0 %v2212_v18 }
 0xa0f   : > { %2129 = vset.pattern.permute.xlu1 %v2212_v18 }
 0xa10   : > { %1036 = vperm.xlu1 %2129, %v1018_v3  }
 0xa14   : > { %1031 = vperm.xlu1 %2129, %v1017_v39  }
 0xa18   : > { %2131 = vset.pattern.permute.xlu1 %v2213_v20  ;;  %v1520_v20 = vsub.f32 %v2667_v30, %v2694_v26  ;;  %v1901_v30 = vld [vmem:[%s2818_s6 + $0x28] sm:$0xff] }
 0xa19   : > { %1583 = vperm.xlu1 %2131, %v1017_v39  }
 0xa1d   : > { %2133 = vset.pattern.permute.xlu1 %v2212_v18 }
 0xa1e   : > { %1703 = vperm.xlu1 %2133, %v1699_v45  }
 0xa22   : > { %1708 = vperm.xlu1 %2133, %v1700_v4  }
 0xa79   : > { %v1545_v31 = vpop.permute.xlu0 %1544  ;;  %v1540_v34 = vpop.permute.xlu1 %1539 }
 0xa7a   : > { %v1550_v32 = vmul.f32 %v1545_v31, %v1522_v35  ;;  %v1549_v49 = vmul.f32 %v1540_v34, %v1521_v21 }
 0xa7c   : > { %v1570_v57 = vadd.f32 %v1565_v33, %v1550_v32  ;;  %v1569_v62 = vadd.f32 %v1561_v52, %v1549_v49 }
 0xa7d   : > { %v1535_v59 = vpop.permute.xlu1 %1534 }
 0xa7e   : > { %v1548_v18 = vmul.f32 %v1535_v59, %v1520_v20  ;;  %1994 = vmatprep.subr.mxu0 %v1570_v57  ;;  %v1588_v9 = vpop.permute.xlu0 %1587 }
 0xa7f   : > { %1995 = vmatpush3.msra.mxu0 %v1570_v57 }
 0xa80   : > { %v1568_v53 = vadd.f32 %v1557_v14, %v1548_v18  ;;  %1996 = vmatprep.subr.mxu0 %v1569_v62 }
 0xa81   : > { %1997 = vmatpush3.msra.mxu0 %v1569_v62  ;;  %v1530_v61 = vpop.permute.xlu1 %1529 }
 0xa82   : > { %1998 = vmatprep.subr.mxu0 %v1568_v53  ;;  %v1547_v63 = vmul.f32 %v1530_v61, %v1519_v43 }
 0xa83   : > { %1999 = vmatpush3.msra.mxu0 %v1568_v53  ;;  %v1691_v58 = vpop.permute.xlu0 %1690 }
 0xa86   : > { %v1553_v60 = vpop.permute.xlu1 %1552 }
 0xa87   : > { %v1567_v27 = vadd.f32 %v1553_v60, %v1547_v63 }
 0xa89   : > { %2000 = vmatprep.subr.mxu0 %v1567_v27 }
 0xa8a   : > { %2001 = vmatpush3.msra.mxu0 %v1567_v27 }
 0xa8b   : > { %2003 = vmatmul.mubr.msk.f32.vlgmr.msra.gmra.mxu0 %vm1039_vm11, %v1901_v30  ;;  %v1037_v54 = vpop.permute.xlu1 %1036 }
 0xa8c   : > { %2005 = vmatprep.mubr.msk.f32.mxu0 %vm1039_vm11, %v1902_v0  ;;  %v1134_v2 = vadd.f32 %v1983_v5, %v1037_v54 }
 0xa8f   : > { %2006 = vmatmul.mubr.msk.f32.gmra.mxu0 %vm1039_vm11, %v1903_v41  ;;  %v1032_v7 = vpop.permute.xlu1 %1031 }
 0xa90   : > { %v1129_v16 = vadd.f32 %v1128_v6, %v1032_v7 }
 0xa94   : > { %v1584_v15 = vpop.permute.xlu1 %1583 }
 0xa99   : > { %v1704_v50 = vpop.permute.xlu1 %1703 }
 0xa9d   : > { %v1709_v23 = vpop.permute.xlu1 %1708 }
 0xb4b   : > { %v2004_v8 = vpop.f32.mrf.mxu0 }
 0xb4d   : > { %v1668_v10 = vpop.f32.mrf.mxu0 }
 0xb4f   : > { %v2007_v11 = vpop.f32.mrf.mxu0 }
 0xb50   : > { %v1682_v48 = vadd.f32 %v2007_v11, %v1588_v9 }
 0xb51   : > { %v1676_v55 = vpop.f32.mrf.mxu0 }
 0xb52   : > { %v1686_v17 = vadd.f32 %v1682_v48, %v1134_v2  ;;  %v1677_v13 = vadd.f32 %v1676_v55, %v1584_v15 }
 0xb54   : > { %v1685_v12 = vadd.f32 %v1677_v13, %v1129_v16  ;;  %v1694_v46 = vmul.f32 %v1691_v58, %v1686_v17  ;;  %vm1688_vm7 = vcmp.gt.f32.partialorder %v1686_v17, 0.0 }
 0xb56   : > { %v1693_v25 = vmul.f32 %v1691_v58, %v1685_v12  ;;  %v1696_v26 = vsel %vm1688_vm7, %v1686_v17, %v1694_v46  ;;  %vm1687_vm8 = vcmp.gt.f32.partialorder %v1685_v12, 0.0 }
 0xb57   : > { %2008 = vmatprep.subr.mxu1 %v1696_v26 }
 0xb58   : > { %2009 = vmatpush3.msra.mxu1 %v1696_v26  ;;  %v1695_v44 = vsel %vm1687_vm8, %v1685_v12, %v1693_v25 }
 0xb59   : > { %2010 = vmatprep.subr.mxu1 %v1695_v44 }
 0xb5a   : > { %2011 = vmatpush3.msra.mxu1 %v1695_v44 }
 0xb5b   : > { %2013 = vmatmul.mubr.msk.f32.vlgmr.msra.gmra.mxu1 %vm484_vm0, %v1698_v47 }
 0xc1b   : > { %v2014_v51 = vpop.f32.mrf.mxu1 }
 0xc1c   : > { %v1789_v56 = vadd.f32 %v2014_v51, %v1709_v23 }
 0xc1d   : > { %v1783_v22 = vpop.f32.mrf.mxu1 }
 0xc1e   : > { %v1784_v40 = vadd.f32 %v1783_v22, %v1704_v50  ;;  %1793 = vst [vmem:[%s379_s30 + $0x8] sm:$0xff] %v1789_v56 }
 0xc20   : > { %1792 = vst [vmem:[%s379_s30] sm:$0xff] %v1784_v40 }
 0xc21   : > { %2163 = shalt.err (!%p2160_p3)
}
 0xc22   : > { %s2164_s25 = scalar_lea.hbm %s2770_s16, 256  ;;  %s2168_s14 = scalar_lea.hbm %s2823_s11, 512 }
 0xc23   : > { %p2165_p4 = scmp.ne.s32.totalorder %s2770_s16, %s2164_s25  ;;  %p2169_p9 = scmp.lt.s32.totalorder %s2770_s16, %s2823_s11 }
 0xc24   : > { %p2170_p10 = scmp.lt.s32.totalorder %s2168_s14, %s2164_s25 }
 0xc25   : > { %p2166_p7 = pnand %p2165_p4, %p2336_p5 }
 0xc26   : > { %p2171_p11 = por %p2170_p10, %p2169_p9 }
 0xc27   : > { %p2167_p8 = pneg %p2166_p7 }
 0xc29   : > { %p2172_p12 = pnand %p2171_p11, %p2167_p8 }
 0xc2b   : > { %2175 = shalt.err (!%p2172_p12)
}
 0xc2c   : > { %s2236_s0 = smov 128   ;;  %s2237_s21 = smov 8  }
 0xc2d   : > { %2015 = dma.vmem_to_hbm [thread:$0]  (%p2336_p5), %s2765_s12, 256, %s2770_s16, %s2772_s22, %s2236_s0, %s2236_s0, %s2237_s21  }
 0xc2e PF: > { %p2021_p13 = scmp.ge.s32.totalorder %s2210_s20, 2  ;;  %s1823_s29 = sand.u32 1, %s2198_s17  }
 0xc2f   : > { %s1824_s25 = scalar_lea.sflag [#allocation3], %s1823_s29 }
 0xc30   : > { %p2018_p0 = pnand %p2021_p13, %p2340_p6 }
 0xc32   : > { %p2019_p1 = pneg %p2018_p0 }
 0xc34   : > { %2193 = dma.done.wait (%p2019_p1), %s1824_s25, 256  }
 0xc35   : > { %2195 = vsyncadd (%p2019_p1), %s1824_s25, 4294967040  ;;  %p21_p2 = scmp.ge.s32.totalorder %s2323_s23, 4   ;;  %s2828_s17 = smov %s2202_s18 }
 0xc36   : > { %s2829_s18 = smov %s2206_s19  ;;  %s2830_s19 = smov %s2334_s26 }
 0xc37   : > { %s2831_s20 = smov %s2323_s23  ;;  %23 = sbr.rel (!%p21_p2) target bundleno = 5 (0x5), region = 101 }
 0xc3c   :  { %1829 = vsyncpa [#allocation3], 1 }
 0xc3d   :  { %1831 = vsyncpa [#allocation3 + $0x1], 1 }

</bundles_post_ra>
